<compile_context>
chip_gen: v7x
topology: tpu7x:2x2x1
jax: 0.10.0
libtpu: 0.0.40
codegen_flags: <defaults>
</compile_context>

<pallas_src>
import math
import numpy as np
import jax
import jax.numpy as jnp
from jax.experimental import pallas as pl
from jax.experimental.pallas import tpu as pltpu

NEG = -1e30
K_NEIGHBORS = 64


# ---------------------------------------------------------------------------
# Device-dependent tiling budget
# ---------------------------------------------------------------------------
def _tile_budget():
    """Returns (tm_max, vmem_limit_bytes, force_m_split)."""
    try:
        vmem = int(pltpu.get_tpu_info().vmem_capacity_bytes)
    except Exception:
        vmem = 0
    if vmem >= 100 * 1024 * 1024:
        # v5e / v6e: 128 MiB VMEM, single TensorCore -> big tiles, no split.
        return 128, 96 * 1024 * 1024, False
    # v7x (64 MiB, 2 TensorCores) or unknown -> cap tiles, keep >=2 M steps.
    return 64, 48 * 1024 * 1024, True


def _up8(v):
    return ((int(v) + 7) // 8) * 8


def _choose_tm(M, tm_max, force_split):
    if force_split:
        return int(max(8, min(tm_max, _up8((M + 1) // 2))))
    return int(max(8, min(tm_max, _up8(M))))


def _replicated_specs(arrays, grid_ndim):
    specs = []
    for a in arrays:
        zero = (0,) * a.ndim
        if grid_ndim == 1:
            specs.append(pl.BlockSpec(a.shape, lambda i, z=zero: z))
        else:
            specs.append(pl.BlockSpec(a.shape, lambda b, i, z=zero: z))
    return specs


# ---------------------------------------------------------------------------
# Pallas kernels
# ---------------------------------------------------------------------------
def _pointconv_kernel(xg_ref, relp_ref, mb_ref,
                      w1p_ref, w2_ref, b2_ref, w3_ref, b3_ref,
                      out_ref):
    """Edge MLP (x-part pre-projected) + masked max over neighbor axis.

    xg_ref   : [tm*K, C1] bf16  gathered (x_j @ W1x + b1), per edge
    relp_ref : [tm*K, 8]  bf16  (pos_j - pos_i) padded 3 -> 8
    mb_ref   : [tm*K, 1]  f32   additive mask: 0 valid, -1e30 invalid
    out_ref  : [tm, Cout] bf16
    """
    tm, cout = out_ref.shape
    rows = xg_ref.shape[0]
    k = rows // tm

    # Layer 1: pre-projected x part + rel-pos projection (f32 accumulation).
    h = xg_ref[...].astype(jnp.float32) + jnp.dot(
        relp_ref[...], w1p_ref[...], preferred_element_type=jnp.float32)
    h = jnp.maximum(h, 0.0).astype(jnp.bfloat16)
    h = jnp.dot(h, w2_ref[...], preferred_element_type=jnp.float32) + b2_ref[...]
    h = jnp.maximum(h, 0.0).astype(jnp.bfloat16)
    h = jnp.dot(h, w3_ref[...], preferred_element_type=jnp.float32) + b3_ref[...]

    # Additive neighbor mask on the flat activations, then plain K-axis max.
    h = h + mb_ref[...]
    out_ref[...] = jnp.max(h.reshape(tm, k, cout), axis=1).astype(out_ref.dtype)


def _global_head_kernel(fx_ref, fp_ref, rb_ref,
                        w1x_ref, w1p_ref, b1_ref, w2_ref, b2_ref, w3_ref, b3_ref,
                        hw_ref, hb_ref,
                        out_ref, acc_ref):
    """GlobalSAModule MLP + per-batch running max pool + folded head MLP.

    Grid is (B, n_tiles): outer axis = batch (parallel), inner = point tiles
    of that batch (arbitrary / reduction).

    fx_ref  : [1, tn, 256] bf16   per-point features x
    fp_ref  : [1, tn, 8]   bf16   per-point pos padded 3 -> 8
    rb_ref  : [1, tn, 1]   f32    additive row mask: 0 valid, -1e30 pad row
    out_ref : [1, 8, 128]  f32    head output (row 0, first 4 lanes valid)
    acc_ref : [1, 1024]    f32    VMEM running max for the current batch
    """
    i = pl.program_id(1)

    @pl.when(i == 0)
    def _():
        acc_ref[...] = jnp.full(acc_ref.shape, NEG, acc_ref.dtype)

    h = (jnp.dot(fx_ref[0], w1x_ref[...], preferred_element_type=jnp.float32)
         + jnp.dot(fp_ref[0], w1p_ref[...], preferred_element_type=jnp.float32)
         + b1_ref[...])
    h = jnp.maximum(h, 0.0).astype(jnp.bfloat16)
    h = jnp.dot(h, w2_ref[...], preferred_element_type=jnp.float32) + b2_ref[...]
    h = jnp.maximum(h, 0.0).astype(jnp.bfloat16)
    h = jnp.dot(h, w3_ref[...], preferred_element_type=jnp.float32) + b3_ref[...]

    h = h + rb_ref[0]                                          # [tn, 1024] + [tn, 1]
    acc_ref[...] = jnp.maximum(acc_ref[...], jnp.max(h, axis=0, keepdims=True))

    @pl.when(i == pl.num_programs(1) - 1)
    def _():
        pooled = acc_ref[...].astype(jnp.bfloat16)             # [1, 1024]
        y = jnp.dot(pooled, hw_ref[...],
                    preferred_element_type=jnp.float32) + hb_ref[...]  # [1, 128]
        out_ref[...] = jnp.broadcast_to(y, (1, 8, 128))


# ---------------------------------------------------------------------------
# Pallas wrappers
# ---------------------------------------------------------------------------
def pointconv_apply(xproj, nidx, relpos, mask, w1p, w2, b2, w3, b3):
    """xproj [N, C1] bf16, nidx [M, K] int, relpos [M, K, 3] bf16,
    mask [M, K] -> [M, Cout] bf16."""
    M, K = mask.shape
    C1 = xproj.shape[1]
    Cout = w3.shape[1]

    tm_max, vmem_limit, force_split = _tile_budget()
    tm = _choose_tm(M, tm_max, force_split)
    Mp = pl.cdiv(M, tm) * tm
    pad = Mp - M

    nidx_p = jnp.pad(jnp.asarray(nidx, jnp.int32), ((0, pad), (0, 0)))
    xg = jnp.take(xproj, nidx_p.reshape(-1), axis=0)            # [Mp*K, C1] bf16
    relp = jnp.pad(relpos, ((0, pad), (0, 0), (0, 8 - relpos.shape[-1])))
    relp = relp.reshape(Mp * K, 8)                              # bf16
    maskp = jnp.pad(jnp.asarray(mask, jnp.float32), ((0, pad), (0, 0)))
    maskbias = jnp.where(maskp > 0.5, 0.0, NEG).astype(jnp.float32)
    maskbias = maskbias.reshape(Mp * K, 1)

    w1p_pad = jnp.zeros((8, C1), jnp.bfloat16)
    w1p_pad = w1p_pad.at[:w1p.shape[0]].set(w1p.astype(jnp.bfloat16))
    kw = (w1p_pad, w2.astype(jnp.bfloat16), b2.astype(jnp.float32),
          w3.astype(jnp.bfloat16), b3.astype(jnp.float32))

    out = pl.pallas_call(
        _pointconv_kernel,
        out_shape=jax.ShapeDtypeStruct((Mp, Cout), jnp.bfloat16),
        grid=(Mp // tm,),
        in_specs=[pl.BlockSpec((tm * K, C1), lambda i: (i, 0)),
                  pl.BlockSpec((tm * K, 8), lambda i: (i, 0)),
                  pl.BlockSpec((tm * K, 1), lambda i: (i, 0))]
                 + _replicated_specs(kw, 1),
        out_specs=pl.BlockSpec((tm, Cout), lambda i: (i, 0)),
        compiler_params=pltpu.CompilerParams(
            dimension_semantics=("parallel",),
            vmem_limit_bytes=vmem_limit),
    )(xg, relp, maskbias, *kw)
    return out[:M]


def global_head_apply(x2, pos2, batch2, num_batches, sa3_params, head_params):
    """x2 [N2, 256] bf16, pos2 [N2, 3] f32, batch2 [N2] -> [B, 4] f32."""
    w1, b1, w2, b2, w3, b3 = sa3_params
    Cx = x2.shape[1]
    Cmid = w3.shape[1]                                          # 1024

    w1x = w1[:Cx].astype(jnp.bfloat16)                          # [256, 256]
    w1p = jnp.zeros((8, w1.shape[1]), jnp.bfloat16)
    w1p = w1p.at[:w1.shape[0] - Cx].set(w1[Cx:].astype(jnp.bfloat16))

    # Fold head MLP([1024,128,128,4], act=None) into one matrix (BN identity,
    # dropout identity in eval), padded to a lane-dense 128-wide output.
    h1w, h1b, h2w, h2b, h3w, h3b = head_params
    hw = h1w @ h2w @ h3w                                        # [1024, 4]
    hb = (h1b @ h2w + h2b) @ h3w + h3b                          # [1, 4]
    Cout = hw.shape[1]
    hw_pad = jnp.zeros((Cmid, 128), jnp.bfloat16).at[:, :Cout].set(
        hw.astype(jnp.bfloat16))
    hb_pad = jnp.zeros((1, 128), jnp.float32).at[:, :Cout].set(
        hb.astype(jnp.float32))

    kparams = (w1x, w1p, b1.astype(jnp.float32),
               w2.astype(jnp.bfloat16), b2.astype(jnp.float32),
               w3.astype(jnp.bfloat16), b3.astype(jnp.float32),
               hw_pad, hb_pad)

    # Per-batch contiguous, tile-padded layout (no [B, tn, 1024] broadcast).
    batch_np = np.asarray(batch2).astype(np.int64)
    N2 = batch_np.shape[0]
    counts = np.bincount(batch_np, minlength=num_batches)
    maxc = int(max(1, counts.max()))
    tn = int(min(256, _up8(maxc)))
    ntiles = -(-maxc // tn)
    Npb = ntiles * tn

    order = np.argsort(batch_np, kind="stable")
    bsort = batch_np[order]
    starts = np.concatenate(([0], np.cumsum(counts)))[:num_batches]
    pos_in_b = np.arange(N2) - starts[bsort]
    rows = bsort * Npb + pos_in_b

    fx = jnp.zeros((num_batches * Npb, Cx), jnp.bfloat16)
    fx = fx.at[rows].set(x2[order]).reshape(num_batches, Npb, Cx)
    fp_src = jnp.pad(pos2.astype(jnp.bfloat16), ((0, 0), (0, 5)))
    fp = jnp.zeros((num_batches * Npb, 8), jnp.bfloat16)
    fp = fp.at[rows].set(fp_src[order]).reshape(num_batches, Npb, 8)
    rb = jnp.full((num_batches * Npb, 1), NEG, jnp.float32)
    rb = rb.at[rows].set(0.0).reshape(num_batches, Npb, 1)

    _, vmem_limit, _ = _tile_budget()
    out = pl.pallas_call(
        _global_head_kernel,
        out_shape=jax.ShapeDtypeStruct((num_batches, 8, 128), jnp.float32),
        grid=(num_batches, ntiles),
        in_specs=[pl.BlockSpec((1, tn, Cx), lambda b, i: (b, i, 0)),
                  pl.BlockSpec((1, tn, 8), lambda b, i: (b, i, 0)),
                  pl.BlockSpec((1, tn, 1), lambda b, i: (b, i, 0))]
                 + _replicated_specs(kparams, 2),
        out_specs=pl.BlockSpec((1, 8, 128), lambda b, i: (b, 0, 0)),
        scratch_shapes=[pltpu.VMEM((1, Cmid), jnp.float32)],
        compiler_params=pltpu.CompilerParams(
            dimension_semantics=("parallel", "arbitrary"),
            vmem_limit_bytes=vmem_limit),
    )(fx, fp, rb, *kparams)
    return out[:, 0, :Cout]


# ---------------------------------------------------------------------------
# Host-side glue: deterministic FPS and radius-graph construction (numpy)
# ---------------------------------------------------------------------------
def fps_indices(pos, batch, ratio):
    pos = np.asarray(pos)
    batch = np.asarray(batch)
    out = []
    for b in np.unique(batch):
        ids = np.where(batch == b)[0]
        n = int(math.ceil(ids.shape[0] * ratio))
        p = pos[ids]
        sel = [0]                                   # deterministic start
        d = np.sum((p - p[0]) ** 2, axis=-1)
        for _ in range(n - 1):
            nxt = int(np.argmax(d))
            sel.append(nxt)
            d = np.minimum(d, np.sum((p - p[nxt]) ** 2, axis=-1))
        out.append(ids[np.array(sel, dtype=np.int64)])
    return np.concatenate(out)


def radius_dense(pos, batch, q_idx, r, K):
    """For each query point, up to K same-batch points within radius r."""
    pos = np.asarray(pos)
    batch = np.asarray(batch)
    q_idx = np.asarray(q_idx)
    q_pos, q_batch = pos[q_idx], batch[q_idx]
    d2 = np.sum((q_pos[:, None, :] - pos[None, :, :]) ** 2, axis=-1)
    within = (d2 <= r * r) & (q_batch[:, None] == batch[None, :])
    M = within.shape[0]
    nidx = np.zeros((M, K), dtype=np.int32)
    nmask = np.zeros((M, K), dtype=np.float32)
    for i in range(M):
        cand = np.where(within[i])[0][:K]
        nidx[i, :len(cand)] = cand
        nmask[i, :len(cand)] = 1.0
    return nidx, nmask


# ---------------------------------------------------------------------------
# Parameters (deterministic, synthetic)
# ---------------------------------------------------------------------------
def init_mlp_params(key, dims):
    params = []
    for i in range(len(dims) - 1):
        key, kw, kb = jax.random.split(key, 3)
        w = jax.random.normal(kw, (dims[i], dims[i + 1]), jnp.float32) / math.sqrt(dims[i])
        b = 0.01 * jax.random.normal(kb, (1, dims[i + 1]), jnp.float32)
        params += [w, b]
    return params, key


# ---------------------------------------------------------------------------
# Net forward
# ---------------------------------------------------------------------------
def sa_module(x, pos, batch, conv_params, ratio, r):
    idx = fps_indices(pos, batch, ratio)
    nidx, nmask = radius_dense(pos, batch, idx, r, K_NEIGHBORS)
    w1, b1, w2, b2, w3, b3 = conv_params
    Cx = x.shape[1]
    # Layer-1 linearity split: project the x_j part once per source point
    # (bias folded in), gather the projection; only the 3-channel rel-pos is
    # projected per edge inside the kernel.
    xproj = (jnp.dot(x.astype(jnp.bfloat16), w1[:Cx].astype(jnp.bfloat16),
                     preferred_element_type=jnp.float32)
             + b1).astype(jnp.bfloat16)
    relpos = (pos[nidx] - pos[idx][:, None, :]).astype(jnp.bfloat16)
    out = pointconv_apply(xproj, nidx, relpos, nmask, w1[Cx:], w2, b2, w3, b3)
    return out, pos[idx], batch[idx]


def net_forward(x, pos, batch, params, num_batches):
    # SA1: fps(0.2) + radius(2) + PointNetConv(MLP[F+3,64,64,128])
    x1, pos1, batch1 = sa_module(x, pos, batch, params["sa1"], ratio=0.2, r=2.0)
    # SA2: fps(0.25) + radius(8) + PointNetConv(MLP[131,128,128,256])
    x2, pos2, batch2 = sa_module(x1, pos1, batch1, params["sa2"], ratio=0.25, r=8.0)
    # SA3 (GlobalSAModule MLP[259,256,512,1024]) + global_max_pool + head,
    # fused into one Pallas kernel.
    return global_head_apply(x2, pos2, batch2, num_batches,
                             params["sa3"], params["head"])


# ---------------------------------------------------------------------------
if __name__ == "__main__":
    B = 2                # batch graphs
    Nb = 32              # points per graph
    num_features = 4
    nm = 1               # neuron_multiplier (0 -> 1 per the module)

    key = jax.random.PRNGKey(0)
    kx, kp, kparam = jax.random.split(key, 3)
    x = jax.random.normal(kx, (B * Nb, num_features), jnp.float32)
    pos = 2.0 * jax.random.normal(kp, (B * Nb, 3), jnp.float32)
    batch = jnp.repeat(jnp.arange(B, dtype=jnp.int32), Nb)

    params = {}
    params["sa1"], kparam = init_mlp_params(kparam, [3 + num_features, 64 * nm, 64 * nm, 128 * nm])
    params["sa2"], kparam = init_mlp_params(kparam, [128 * nm + 3, 128 * nm, 128 * nm, 256 * nm])
    params["sa3"], kparam = init_mlp_params(kparam, [256 * nm + 3, 256 * nm, 512 * nm, 1024 * nm])
    params["head"], kparam = init_mlp_params(kparam, [1024 * nm, 128 * nm, 128 * nm, 4])

    out = net_forward(x, pos, batch, params, B)
    out = jax.block_until_ready(out)
    assert out.shape == (B, 4) and out.dtype == jnp.float32
    assert bool(jnp.all(jnp.isfinite(out)))
    print("KERNEL_OK")
</pallas_src>

<mosaic_0001>
module attributes {stable_mosaic.version = 11 : i64} {
  func.func @_pointconv_kernel(%arg0: i32, %arg1: memref<512x64xbf16, #tpu.memory_space<vmem>>, %arg2: memref<512x8xbf16, #tpu.memory_space<vmem>>, %arg3: memref<512x1xf32, #tpu.memory_space<vmem>>, %arg4: memref<8x64xbf16, #tpu.memory_space<vmem>>, %arg5: memref<64x64xbf16, #tpu.memory_space<vmem>>, %arg6: memref<1x64xf32, #tpu.memory_space<vmem>>, %arg7: memref<64x128xbf16, #tpu.memory_space<vmem>>, %arg8: memref<1x128xf32, #tpu.memory_space<vmem>>, %arg9: memref<8x128xbf16, #tpu.memory_space<vmem>>) attributes {dimension_semantics = [#tpu.dimension_semantics<parallel>], iteration_bounds = array<i64: 2>, scalar_prefetch = 0 : i64, scratch_operands = 0 : i64, tpu.core_type = #tpu.core_type<tc>, window_params = [{transform_indices = @transform_0, window_bounds = array<i64: 512, 64>}, {transform_indices = @transform_1, window_bounds = array<i64: 512, 8>}, {transform_indices = @transform_2, window_bounds = array<i64: 512, 1>}, {pipeline_mode = #tpu.pipeline_mode<synchronous>, transform_indices = @transform_3, window_bounds = array<i64: 8, 64>}, {pipeline_mode = #tpu.pipeline_mode<synchronous>, transform_indices = @transform_4, window_bounds = array<i64: 64, 64>}, {pipeline_mode = #tpu.pipeline_mode<synchronous>, transform_indices = @transform_5, window_bounds = array<i64: 1, 64>}, {pipeline_mode = #tpu.pipeline_mode<synchronous>, transform_indices = @transform_6, window_bounds = array<i64: 64, 128>}, {pipeline_mode = #tpu.pipeline_mode<synchronous>, transform_indices = @transform_7, window_bounds = array<i64: 1, 128>}, {transform_indices = @transform_8, window_bounds = array<i64: 8, 128>}]} {
    %c0 = arith.constant 0 : index
    %c0_0 = arith.constant 0 : index
    %0 = vector.load %arg1[%c0, %c0_0] : memref<512x64xbf16, #tpu.memory_space<vmem>>, vector<512x64xbf16>
    %1 = arith.extf %0 : vector<512x64xbf16> to vector<512x64xf32>
    %c0_1 = arith.constant 0 : index
    %c0_2 = arith.constant 0 : index
    %2 = vector.load %arg2[%c0_1, %c0_2] : memref<512x8xbf16, #tpu.memory_space<vmem>>, vector<512x8xbf16>
    %c0_3 = arith.constant 0 : index
    %c0_4 = arith.constant 0 : index
    %3 = vector.load %arg4[%c0_3, %c0_4] : memref<8x64xbf16, #tpu.memory_space<vmem>>, vector<8x64xbf16>
    %cst = arith.constant dense<0.000000e+00> : vector<512x64xf32>
    %4 = tpu.matmul %2, %3, %cst {dimension_numbers = #tpu.dot_dimension_numbers<[1], [0], [0], [1], [0, 0, 1, 1], [], []>} : vector<512x8xbf16>, vector<8x64xbf16>, vector<512x64xf32> -> vector<512x64xf32>
    %5 = arith.addf %1, %4 : vector<512x64xf32>
    %cst_5 = arith.constant 0.000000e+00 : f32
    %6 = vector.broadcast %cst_5 : f32 to vector<512x64xf32>
    %7 = arith.maximumf %5, %6 : vector<512x64xf32>
    %8 = arith.truncf %7 : vector<512x64xf32> to vector<512x64xbf16>
    %c0_6 = arith.constant 0 : index
    %c0_7 = arith.constant 0 : index
    %9 = vector.load %arg5[%c0_6, %c0_7] : memref<64x64xbf16, #tpu.memory_space<vmem>>, vector<64x64xbf16>
    %cst_8 = arith.constant dense<0.000000e+00> : vector<512x64xf32>
    %10 = tpu.matmul %8, %9, %cst_8 {dimension_numbers = #tpu.dot_dimension_numbers<[1], [0], [0], [1], [0, 0, 1, 1], [], []>} : vector<512x64xbf16>, vector<64x64xbf16>, vector<512x64xf32> -> vector<512x64xf32>
    %c0_9 = arith.constant 0 : index
    %c0_10 = arith.constant 0 : index
    %11 = vector.load %arg6[%c0_9, %c0_10] : memref<1x64xf32, #tpu.memory_space<vmem>>, vector<1x64xf32>
    %12 = vector.broadcast %11 : vector<1x64xf32> to vector<512x64xf32>
    %13 = arith.addf %10, %12 : vector<512x64xf32>
    %cst_11 = arith.constant 0.000000e+00 : f32
    %14 = vector.broadcast %cst_11 : f32 to vector<512x64xf32>
    %15 = arith.maximumf %13, %14 : vector<512x64xf32>
    %16 = arith.truncf %15 : vector<512x64xf32> to vector<512x64xbf16>
    %c0_12 = arith.constant 0 : index
    %c0_13 = arith.constant 0 : index
    %17 = vector.load %arg7[%c0_12, %c0_13] : memref<64x128xbf16, #tpu.memory_space<vmem>>, vector<64x128xbf16>
    %cst_14 = arith.constant dense<0.000000e+00> : vector<512x128xf32>
    %18 = tpu.matmul %16, %17, %cst_14 {dimension_numbers = #tpu.dot_dimension_numbers<[1], [0], [0], [1], [0, 0, 1, 1], [], []>} : vector<512x64xbf16>, vector<64x128xbf16>, vector<512x128xf32> -> vector<512x128xf32>
    %c0_15 = arith.constant 0 : index
    %c0_16 = arith.constant 0 : index
    %19 = vector.load %arg8[%c0_15, %c0_16] : memref<1x128xf32, #tpu.memory_space<vmem>>, vector<1x128xf32>
    %20 = vector.broadcast %19 : vector<1x128xf32> to vector<512x128xf32>
    %21 = arith.addf %18, %20 : vector<512x128xf32>
    %c0_17 = arith.constant 0 : index
    %c0_18 = arith.constant 0 : index
    %22 = vector.load %arg3[%c0_17, %c0_18] : memref<512x1xf32, #tpu.memory_space<vmem>>, vector<512x1xf32>
    %23 = vector.broadcast %22 : vector<512x1xf32> to vector<512x128xf32>
    %24 = arith.addf %21, %23 : vector<512x128xf32>
    %25 = vector.shape_cast %24 : vector<512x128xf32> to vector<8x64x128xf32>
    %cst_19 = arith.constant dense<0xFF800000> : vector<8x128xf32>
    %26 = vector.multi_reduction <maximumf>, %25, %cst_19 [1] : vector<8x64x128xf32> to vector<8x128xf32>
    %27 = arith.truncf %26 : vector<8x128xf32> to vector<8x128xbf16>
    %c0_20 = arith.constant 0 : index
    %c0_21 = arith.constant 0 : index
    %28 = vector.load %arg9[%c0_20, %c0_21] : memref<8x128xbf16, #tpu.memory_space<vmem>>, vector<8x128xbf16>
    tpu.vector_store %arg9[%c0_20, %c0_21], %27 {strides = array<i32>} : memref<8x128xbf16, #tpu.memory_space<vmem>>, vector<8x128xbf16>,
    return
  }
  func.func @transform_0(%arg0: i32) -> (i32, i32) {
    %c0_i32 = arith.constant 0 : i32
    %c0_i32_0 = arith.constant 0 : i32
    return %arg0, %c0_i32 : i32, i32
  }
  func.func @transform_1(%arg0: i32) -> (i32, i32) {
    %c0_i32 = arith.constant 0 : i32
    %c0_i32_0 = arith.constant 0 : i32
    return %arg0, %c0_i32 : i32, i32
  }
  func.func @transform_2(%arg0: i32) -> (i32, i32) {
    %c0_i32 = arith.constant 0 : i32
    %c0_i32_0 = arith.constant 0 : i32
    return %arg0, %c0_i32 : i32, i32
  }
  func.func @transform_3(%arg0: i32) -> (i32, i32) {
    %c0_i32 = arith.constant 0 : i32
    %c0_i32_0 = arith.constant 0 : i32
    %c0_i32_1 = arith.constant 0 : i32
    return %c0_i32, %c0_i32_0 : i32, i32
  }
  func.func @transform_4(%arg0: i32) -> (i32, i32) {
    %c0_i32 = arith.constant 0 : i32
    %c0_i32_0 = arith.constant 0 : i32
    %c0_i32_1 = arith.constant 0 : i32
    return %c0_i32, %c0_i32_0 : i32, i32
  }
  func.func @transform_5(%arg0: i32) -> (i32, i32) {
    %c0_i32 = arith.constant 0 : i32
    %c0_i32_0 = arith.constant 0 : i32
    %c0_i32_1 = arith.constant 0 : i32
    return %c0_i32, %c0_i32_0 : i32, i32
  }
  func.func @transform_6(%arg0: i32) -> (i32, i32) {
    %c0_i32 = arith.constant 0 : i32
    %c0_i32_0 = arith.constant 0 : i32
    %c0_i32_1 = arith.constant 0 : i32
    return %c0_i32, %c0_i32_0 : i32, i32
  }
  func.func @transform_7(%arg0: i32) -> (i32, i32) {
    %c0_i32 = arith.constant 0 : i32
    %c0_i32_0 = arith.constant 0 : i32
    %c0_i32_1 = arith.constant 0 : i32
    return %c0_i32, %c0_i32_0 : i32, i32
  }
  func.func @transform_8(%arg0: i32) -> (i32, i32) {
    %c0_i32 = arith.constant 0 : i32
    %c0_i32_0 = arith.constant 0 : i32
    return %arg0, %c0_i32 : i32, i32
  }
}

</mosaic_0001>

<bundles_post_ra>
// kernel: tpu_custom_call.1
= control target key start
LH: loop header
LB: loop body
LE: loop exit
PB: predicated region body
PF: predicated region fallthrough
CT: control target
= control target key end

     0   :  { %13 = vsyncpa [#allocation3], 0  ;;  %s4437_s0 = inlined_call_operand.vmem [shape: bf16[1024,64], index: 0, kind: input, shape index: {}]   ;;  %s4438_s1 = inlined_call_operand.vmem [shape: bf16[1024,8], index: 1, kind: input, shape index: {}]   ;;  %s4439_s2 = inlined_call_operand.vmem [shape: f32[1024,1], index: 2, kind: input, shape index: {}]   ;;  %s4440_s3 = inlined_call_operand.vmem [shape: bf16[8,64], index: 3, kind: input, shape index: {}]   ;;  %s4441_s4 = inlined_call_operand.vmem [shape: bf16[64,64], index: 4, kind: input, shape index: {}]   ;;  %s4442_s5 = inlined_call_operand.vmem [shape: f32[1,64], index: 5, kind: input, shape index: {}]   ;;  %s4443_s6 = inlined_call_operand.vmem [shape: bf16[64,128], index: 6, kind: input, shape index: {}]   ;;  %s4444_s7 = inlined_call_operand.vmem [shape: f32[1,128], index: 7, kind: input, shape index: {}]   ;;  %s4445_s8 = inlined_call_operand.hbm [shape: bf16[16,128], index: 8, kind: output, shape index: {}]  }
   0x1   :  { %15 = vsyncpa [#allocation3 + $0x1], 0  ;;  %s3745_s27 = smov 0   ;;  %s3747_s28 = smov 0  }
   0x2   :  { %s3749_s29 = smov 0   ;;  %s3751_s30 = smov 0  }
   0x3 LB: > { %s2904_s9 = sadd.s32 4294967295, %s3696_s30   ;;  %s2905_s10 = sadd.s32 4294967294, %s3696_s30   ;;  %s3696_s30 = sphi %s3751_s30, %s4451_s30   ;;  %s3692_s29 = sphi %s3749_s29, %s4450_s29   ;;  %s3688_s28 = sphi %s3747_s28, %s4449_s28   ;;  %s3684_s27 = sphi %s3745_s27, %s4448_s27  }
   0x4   : > { %s3768_s11 = sadd.s32 1, %s3696_s30   ;;  %s211_s12 = sadd.s32 1, %s3692_s29 }
   0x5   : > { %s208_s13 = ssub.s32 %s3696_s30, %s3768_s11  ;;  %p221_p0 = scmp.ne.s32.totalorder %s3692_s29, %s3688_s28 }
   0x6   : > { %p209_p1 = scmp.eq.s32.totalorder %s208_s13, 0  ;;  %p222_p2 = scmp.eq.s32.totalorder %s2904_s9, 1 }
   0x7   : > { %p227_p3 = scmp.ne.s32.totalorder %s3688_s28, %s3684_s27  ;;  %p228_p4 = scmp.eq.s32.totalorder %s2905_s10, 1 }
   0x8   : > { %s3778_s14 = scalar_select %p209_p1, %s3692_s29, %s211_s12  }
   0x9   : > { %p3780_p5 = por %p222_p2, %p221_p0  ;;  %p3784_p6 = por %p228_p4, %p227_p3 }
   0xa   : > { %p2908_p7 = scmp.ge.s32.totalorder %s3696_s30, 1  ;;  %p288_p8 = scmp.lt.s32.totalorder %s3696_s30, 3 }
   0xc   : > { %p289_p9 = pnand %p2908_p7, %p288_p8 }
   0xd   : > { %v543_v0 = vld [vmem:[%s4440_s3] sm:$0xf] (!%p289_p9)  ;;  %vm801_vm0 = vcmask (!%p289_p9), 1043456   ;;  %s3793_s19 = sshll.u32 (!%p289_p9), %s2904_s9, 6  ;;  %vm704_vm1 = vcmask (!%p289_p9), 64512   ;;  %v3627_v11 = vld [vmem:[%s4441_s4 + $0x8] sm:$0xff] (!%p289_p9)  }
   0xe   : > { %292 = sbr.rel (%p289_p9) target bundleno = 849 (0x351), region = 52  ;;  %v3626_v1 = vld [vmem:[%s4441_s4] sm:$0xff] (!%p289_p9)   ;;  %3550 = vmatprep.subr.msk.bf16.mxu0 (!%p289_p9), %vm801_vm0, %v543_v0  ;;  %v803_v2 = vsel (!%p289_p9), %vm801_vm0, %v543_v0, 0  ;;  %p333_p10 = scmp.lt.s32.totalorder (!%p289_p9), %s3793_s19, 127  ;;  %3551 = vmatprep.subr.msk.bf16.mxu1 (!%p289_p9), %vm801_vm0, %v543_v0  ;;  %v3628_v14 = vld [vmem:[%s4441_s4 + $0x10] sm:$0xff] (!%p289_p9)   ;;  %v3629_v19 = vld [vmem:[%s4441_s4 + $0x18] sm:$0xff] (!%p289_p9)  }
   0xf   : > { %3339 = vmatpush3.bf16.msra.mxu0 (!%p289_p9), %v803_v2  ;;  %3549 = vmatpush3.bf16.msra.mxu1 (!%p289_p9), %v803_v2  ;;  %v3630_v53 = vld [vmem:[%s4443_s6] sm:$0xff] (!%p289_p9)   ;;  %v3631_v54 = vld [vmem:[%s4443_s6 + $0x8] sm:$0xff] (!%p289_p9)   ;;  %v3698_v56 = vmov (!%p289_p9), 0   ;;  %vm1293_vm2 = vcmask (!%p289_p9), 523264   ;;  %vm2791_vm3 = vcmask (!%p289_p9), 1041409   ;;  %vm2793_vm4 = vcmask (!%p289_p9), 1042434   ;;  %s4395_s18 = scalar_lea.hbm (!%p289_p9), %s4445_s8, %s3793_s19 }
  0x10   : > { %3404 = vmatprep.subr.bf16.mxu1 (!%p289_p9), %v3626_v1  ;;  %3592 = vset.pattern.permute.xlu0 (!%p289_p9), %v3698_v56  ;;  %vm2795_vm5 = vcmask (!%p289_p9), 1043459   ;;  %vm2797_vm6 = vcmask (!%p289_p9), 1044484   ;;  %vm2799_vm7 = vcmask (!%p289_p9), 1045509   ;;  %vm2801_vm8 = vcmask (!%p289_p9), 1046534   ;;  %s329_s9 = sand.u32 (!%p289_p9), 1, %s3688_s28  }
  0x11   : > { %3593 = vset.pattern.permute.xlu1 (!%p289_p9), %v3698_v56  ;;  %3476 = vmatprep.subr.bf16.mxu0 (!%p289_p9), %v3630_v53  ;;  %vm2803_vm9 = vcmask (!%p289_p9), 1047559   ;;  %s2809_s20 = scalar_lea.sflag (!%p289_p9), [#allocation3], %s329_s9 }
  0x15   : > { %s3800_s22 = scalar_select %p333_p10, %s3793_s19, 127 }
  0x17   : > { %s2911_s23 = sshll.u32 %s3800_s22, 2  ;;  %s2915_s10 = sshll.u32 %s3800_s22, 3 }
  0x18   : > { %s3808_s26 = scalar_lea.vmem %s4438_s1, %s2911_s23  ;;  %s3888_s24 = scalar_lea.vmem %s4437_s0, %s2911_s23 }
  0x19   : > { %v3594_v3 = vld [vmem:[%s3808_s26] sm:$0xff]   ;;  %v3595_v4 = vld [vmem:[%s3808_s26 + $0x8] sm:$0xff]   ;;  %v3596_v5 = vld [vmem:[%s3808_s26 + $0x10] sm:$0xff]   ;;  %s3904_s17 = scalar_lea.vmem %s4439_s2, %s2915_s10  ;;  %s2909_s10 = sshll.u32 %s329_s9, 2 }
  0x1a   : > { %3340 = vmatprep.mubr.msk.bf16.mxu0 %vm704_vm1, %v3594_v3  ;;  %v3597_v6 = vld [vmem:[%s3808_s26 + $0x18] sm:$0xff]   ;;  %v3598_v7 = vld [vmem:[%s3808_s26 + $0x20] sm:$0xff]   ;;  %v3599_v8 = vld [vmem:[%s3808_s26 + $0x28] sm:$0xff]   ;;  %s331_s12 = scalar_lea.vmem [#allocation2], %s2909_s10 }
  0x1b   : > { %3341 = vmatmul.mubr.msk.bf16.vlgmr.msra.gmra.mrb[0].mxu0 %vm704_vm1, %v3595_v4  ;;  %v3600_v9 = vld [vmem:[%s3808_s26 + $0x30] sm:$0xff]   ;;  %v3610_v10 = vld [vmem:[%s3808_s26 + $0x80] sm:$0xff]   ;;  %v3611_v12 = vld [vmem:[%s3808_s26 + $0x88] sm:$0xff]   ;;  %s2822_s13 = sshll.u32 %s331_s12, 4  ;;  %s4397_s13 = int_to_ptr.vmem [resolvable:$true] %s2822_s13 }
  0x1c   : > { %3344 = vmatprep.mubr.msk.bf16.mxu0 %vm704_vm1, %v3596_v5  ;;  %3372 = vmatprep.mubr.msk.bf16.mxu1 %vm704_vm1, %v3610_v10  ;;  %v3612_v13 = vld [vmem:[%s3808_s26 + $0x90] sm:$0xff]   ;;  %v3601_v15 = vld [vmem:[%s3808_s26 + $0x38] sm:$0xff]   ;;  %v3602_v16 = vld [vmem:[%s3808_s26 + $0x40] sm:$0xff]   ;;  %s3634_s21 = scalar_lea.vmem %s4397_s13, 64 }
  0x1d   : > { %3373 = vmatmul.mubr.msk.bf16.vlgmr.msra.gmra.mrb[0].mxu1 %vm704_vm1, %v3611_v12  ;;  %v3613_v17 = vld [vmem:[%s3808_s26 + $0x98] sm:$0xff]   ;;  %v3614_v18 = vld [vmem:[%s3808_s26 + $0xa0] sm:$0xff]   ;;  %v3603_v20 = vld [vmem:[%s3808_s26 + $0x48] sm:$0xff]   ;;  %3477 = vmatpush3.bf16.msra.mxu0 %v3630_v53  ;;  %p3635_p11 = scmp.ne.s32.totalorder %s4397_s13, %s3634_s21 }
  0x1e   : > { %3376 = vmatprep.mubr.msk.bf16.mxu1 %vm704_vm1, %v3612_v13  ;;  %3405 = vmatpush3.bf16.msra.mxu1 %v3626_v1  ;;  %v3604_v21 = vld [vmem:[%s3808_s26 + $0x50] sm:$0xff]   ;;  %v3615_v22 = vld [vmem:[%s3808_s26 + $0xa8] sm:$0xff]   ;;  %v3605_v24 = vld [vmem:[%s3808_s26 + $0x58] sm:$0xff]  }
  0x1f   : > { %3406 = vmatprep.subr.bf16.mxu1 %v3627_v11  ;;  %v3616_v23 = vld [vmem:[%s3808_s26 + $0xb0] sm:$0xff]   ;;  %v3617_v25 = vld [vmem:[%s3808_s26 + $0xb8] sm:$0xff]   ;;  %v3606_v26 = vld [vmem:[%s3808_s26 + $0x60] sm:$0xff]   ;;  %3478 = vmatprep.subr.bf16.mxu0 %v3631_v54  ;;  %p3636_p12 = pnand %p3635_p11, %p3780_p5 }
  0x20   : > { %v3618_v27 = vld [vmem:[%s3808_s26 + $0xc0] sm:$0xff]   ;;  %v3607_v28 = vld [vmem:[%s3808_s26 + $0x68] sm:$0xff]   ;;  %v3608_v30 = vld [vmem:[%s3808_s26 + $0x70] sm:$0xff]  }
  0x21   : > { %v3619_v29 = vld [vmem:[%s3808_s26 + $0xc8] sm:$0xff]   ;;  %v3620_v31 = vld [vmem:[%s3808_s26 + $0xd0] sm:$0xff]   ;;  %v3609_v32 = vld [vmem:[%s3808_s26 + $0x78] sm:$0xff]   ;;  %3479 = vmatpush3.bf16.msra.mxu0 %v3631_v54  ;;  %p3637_p13 = pneg %p3636_p12 }
  0x22   : > { %3407 = vmatpush3.bf16.msra.mxu1 %v3627_v11  ;;  %v3621_v33 = vld [vmem:[%s3808_s26 + $0xd8] sm:$0xff]   ;;  %v3622_v34 = vld [vmem:[%s3808_s26 + $0xe0] sm:$0xff]   ;;  %v3623_v35 = vld [vmem:[%s3808_s26 + $0xe8] sm:$0xff]  }
  0x23   : > { %3345 = vmatmul.mubr.msk.bf16.gmra.mrb[4].mxu0 %vm704_vm1, %v3597_v6  ;;  %3408 = vmatprep.subr.bf16.mxu1 %v3628_v14  ;;  %v3624_v36 = vld [vmem:[%s3808_s26 + $0xf0] sm:$0xff]   ;;  %v3625_v37 = vld [vmem:[%s3808_s26 + $0xf8] sm:$0xff]   ;;  %v3202_v38 = vld [vmem:[%s3888_s24 + $0x8] sm:$0xff]  }
  0x24   : > { %3348 = vmatprep.mubr.msk.bf16.mxu0 %vm704_vm1, %v3598_v7  ;;  %v3075_v39 = vld [vmem:[%s3888_s24] sm:$0xff]   ;;  %v3080_v40 = vunpack.c.l.bf16 %v3202_v38  ;;  %v3081_v42 = vunpack.c.h.bf16 %v3202_v38  ;;  %v3204_v49 = vld [vmem:[%s3888_s24 + $0x18] sm:$0xff]   ;;  %v3203_v52 = vld [vmem:[%s3888_s24 + $0x10] sm:$0xff]  }
  0x25   : > { %3377 = vmatmul.mubr.msk.bf16.gmra.mrb[4].mxu1 %vm704_vm1, %v3613_v17  ;;  %v3076_v41 = vunpack.c.l.bf16 %v3075_v39  ;;  %v3077_v44 = vunpack.c.h.bf16 %v3075_v39  ;;  %v3088_v59 = vunpack.c.l.bf16 %v3204_v49  ;;  %v2199_v60 = vld [vmem:[%s3904_s17] sm:$0xff]  ;;  %v2201_v61 = vld [vmem:[%s3904_s17 + $0x10] sm:$0xff]  ;;  %v3084_v0 = vunpack.c.l.bf16 %v3203_v52  ;;  %v2202_v10 = vld [vmem:[%s3904_s17 + $0x18] sm:$0xff] }
  0x26   : > { %3380 = vmatprep.mubr.msk.bf16.mxu1 %vm704_vm1, %v3614_v18  ;;  %3409 = vmatpush3.bf16.msra.mxu1 %v3628_v14  ;;  %v3089_v2 = vunpack.c.h.bf16 %v3204_v49  ;;  %v3632_v3 = vld [vmem:[%s4443_s6 + $0x10] sm:$0xff]   ;;  %v3085_v6 = vunpack.c.h.bf16 %v3203_v52  ;;  %v3206_v13 = vld [vmem:[%s3888_s24 + $0x28] sm:$0xff]   ;;  %v3205_v17 = vld [vmem:[%s3888_s24 + $0x20] sm:$0xff]  }
  0x27   : > { %3410 = vmatprep.subr.bf16.mxu1 %v3629_v19  ;;  %2265 = vperm.xlu0 %3592, %v2199_v60   ;;  %v3218_v14 = vld [vmem:[%s3888_s24 + $0x88] sm:$0xff]   ;;  %v3217_v18 = vld [vmem:[%s3888_s24 + $0x80] sm:$0xff]  }
  0x28   : > { %2275 = vperm.xlu1 %3593, %v2201_v61   ;;  %3480 = vmatprep.subr.bf16.mxu0 %v3632_v3  ;;  %v3141_v39 = vunpack.c.h.bf16 %v3217_v18 }
  0x29   : > { %3481 = vmatpush3.bf16.msra.mxu0 %v3632_v3  ;;  %v2207_v3 = vld [vmem:[%s3904_s17 + $0x40] sm:$0xff] }
  0x2a   : > { %3411 = vmatpush3.bf16.msra.mxu1 %v3629_v19  ;;  %v3633_v19 = vld [vmem:[%s4443_s6 + $0x18] sm:$0xff]  }
  0x2b   : > { %3349 = vmatmul.mubr.msk.bf16.gmra.mrb[8].mxu0 %vm704_vm1, %v3599_v8  ;;  %3482 = vmatprep.subr.bf16.mxu0 %v3633_v19 }
  0x2c   : > { %3352 = vmatprep.mubr.msk.bf16.mxu0 %vm704_vm1, %v3600_v9  ;;  %v2200_v9 = vld [vmem:[%s3904_s17 + $0x8] sm:$0xff]  ;;  %2280 = vperm.xlu1 %3593, %v2202_v10  }
  0x2d   : > { %3381 = vmatmul.mubr.msk.bf16.gmra.mrb[8].mxu1 %vm704_vm1, %v3615_v22  ;;  %2270 = vperm.xlu0 %3592, %v2200_v9  }
  0x2e   : > { %3384 = vmatprep.mubr.msk.bf16.mxu1 %vm704_vm1, %v3616_v23  ;;  %v3096_v23 = vunpack.c.l.bf16 %v3206_v13  ;;  %3483 = vmatpush3.bf16.msra.mxu0 %v3633_v19 }
  0x33   : > { %3353 = vmatmul.mubr.msk.bf16.gmra.mrb[12].mxu0 %vm704_vm1, %v3601_v15 }
  0x34   : > { %3356 = vmatprep.mubr.msk.bf16.mxu0 %vm704_vm1, %v3602_v16 }
  0x35   : > { %3385 = vmatmul.mubr.msk.bf16.gmra.mrb[12].mxu1 %vm704_vm1, %v3617_v25  ;;  %v2203_v25 = vld [vmem:[%s3904_s17 + $0x20] sm:$0xff] }
  0x36   : > { %3388 = vmatprep.mubr.msk.bf16.mxu1 %vm704_vm1, %v3618_v27  ;;  %2285 = vperm.xlu0 %3592, %v2203_v25   ;;  %v2209_v25 = vld [vmem:[%s3904_s17 + $0x50] sm:$0xff] }
  0x3b   : > { %3357 = vmatmul.mubr.msk.bf16.gmra.mrb[16].mxu0 %vm704_vm1, %v3603_v20 }
  0x3c   : > { %3360 = vmatprep.mubr.msk.bf16.mxu0 %vm704_vm1, %v3604_v21 }
  0x3d   : > { %3389 = vmatmul.mubr.msk.bf16.gmra.mrb[16].mxu1 %vm704_vm1, %v3619_v29  ;;  %v3092_v29 = vunpack.c.l.bf16 %v3205_v17 }
  0x3e   : > { %3392 = vmatprep.mubr.msk.bf16.mxu1 %vm704_vm1, %v3620_v31 }
  0x43   : > { %3361 = vmatmul.mubr.msk.bf16.gmra.mrb[20].mxu0 %vm704_vm1, %v3605_v24  ;;  %v3144_v24 = vunpack.c.l.bf16 %v3218_v14 }
  0x44   : > { %3364 = vmatprep.mubr.msk.bf16.mxu0 %vm704_vm1, %v3606_v26  ;;  %v2204_v26 = vld [vmem:[%s3904_s17 + $0x28] sm:$0xff] }
  0x45   : > { %3393 = vmatmul.mubr.msk.bf16.gmra.mrb[20].mxu1 %vm704_vm1, %v3621_v33  ;;  %v3145_v33 = vunpack.c.h.bf16 %v3218_v14  ;;  %2290 = vperm.xlu1 %3593, %v2204_v26   ;;  %v2210_v26 = vld [vmem:[%s3904_s17 + $0x58] sm:$0xff] }
  0x46   : > { %3396 = vmatprep.mubr.msk.bf16.mxu1 %vm704_vm1, %v3622_v34 }
  0x4b   : > { %3365 = vmatmul.mubr.msk.bf16.gmra.mrb[24].mxu0 %vm704_vm1, %v3607_v28 }
  0x4c   : > { %3368 = vmatprep.mubr.msk.bf16.mxu0 %vm704_vm1, %v3608_v30  ;;  %v3140_v30 = vunpack.c.l.bf16 %v3217_v18 }
  0x4d   : > { %3397 = vmatmul.mubr.msk.bf16.gmra.mrb[24].mxu1 %vm704_vm1, %v3623_v35 }
  0x4e   : > { %3400 = vmatprep.mubr.msk.bf16.mxu1 %vm704_vm1, %v3624_v36  ;;  %v3093_v36 = vunpack.c.h.bf16 %v3205_v17 }
  0x53   : > { %3369 = vmatmul.mubr.msk.bf16.gmra.mrb[28].mxu0 %vm704_vm1, %v3609_v32  ;;  %v3097_v32 = vunpack.c.h.bf16 %v3206_v13 }
  0x55   : > { %3401 = vmatmul.mubr.msk.bf16.gmra.mrb[28].mxu1 %vm704_vm1, %v3625_v37  ;;  %v3925_v37 = vld [vmem:[%s3888_s24 + $0x38] sm:$0xff]  }
  0x56   : > { %v3104_v54 = vunpack.c.l.bf16 %v3925_v37  ;;  %v3105_v10 = vunpack.c.h.bf16 %v3925_v37 }
  0xee   : > { %v3342_v43 = vpop.f32.mrb[0].mxu0 }
  0xef   : > { %v1096_v45 = vadd.f32 %v3342_v43, %v3080_v40  ;;  %v839_v46 = vpop.f32.mrb[1].mxu0 }
  0xf0   : > { %v1094_v47 = vadd.f32 %v3076_v41, %v839_v46  ;;  %v3343_v48 = vpop.f32.mrb[2].mxu0  ;;  %v3374_v38 = vpop.f32.mrb[0].mxu1  ;;  %v2206_v46 = vld [vmem:[%s3904_s17 + $0x38] sm:$0xff] }
  0xf1   : > { %v1097_v50 = vadd.f32 %v3343_v48, %v3081_v42  ;;  %v842_v51 = vpop.f32.mrb[3].mxu0  ;;  %v1160_v57 = vmax.f32 %v1096_v45, 0.0  ;;  %v3928_v42 = vld [vmem:[%s3888_s24 + $0x30] sm:$0xff]   ;;  %v1128_v43 = vadd.f32 %v3374_v38, %v3144_v24  ;;  %2300 = vperm.xlu1 %3593, %v2206_v46   ;;  %v3221_v38 = vld [vmem:[%s3888_s24 + $0xa0] sm:$0xff]  }
  0xf2   : > { %v1095_v55 = vadd.f32 %v3077_v44, %v842_v51  ;;  %v1158_v62 = vmax.f32 %v1094_v47, 0.0  ;;  %v967_v44 = vpop.f32.mrb[1].mxu1  ;;  %v2205_v45 = vld [vmem:[%s3904_s17 + $0x30] sm:$0xff]  ;;  %v3220_v51 = vld [vmem:[%s3888_s24 + $0x98] sm:$0xff]   ;;  %v3100_v60 = vunpack.c.l.bf16 %v3928_v42 }
  0xf3   : > { %v1161_v58 = vmax.f32 %v1097_v50, 0.0  ;;  %v1126_v49 = vadd.f32 %v3140_v30, %v967_v44  ;;  %v3375_v50 = vpop.f32.mrb[2].mxu1  ;;  %2295 = vperm.xlu0 %3592, %v2205_v45  }
  0xf4   : > { %v1159_v63 = vmax.f32 %v1095_v55, 0.0  ;;  %v1192_v55 = vmax.f32 %v1128_v43, 0.0  ;;  %v1129_v56 = vadd.f32 %v3375_v50, %v3145_v33 }
  0xf5   : > { %v1223_v1 = vpack.c.bf16 %v1161_v58, %v1160_v57  ;;  %v970_v57 = vpop.f32.mrb[3].mxu1  ;;  %v3219_v58 = vld [vmem:[%s3888_s24 + $0x90] sm:$0xff]   ;;  %v1190_v61 = vmax.f32 %v1126_v49, 0.0 }
  0xf6   : > { %v1222_v4 = vpack.c.bf16 %v1159_v63, %v1158_v62  ;;  %v3346_v5 = vpop.f32.mrb[4].mxu0  ;;  %v1127_v62 = vadd.f32 %v3141_v39, %v970_v57  ;;  %v3149_v19 = vunpack.c.h.bf16 %v3219_v58 }
  0xf7   : > { %v1100_v7 = vadd.f32 %v3346_v5, %v3088_v59  ;;  %v855_v8 = vpop.f32.mrb[5].mxu0  ;;  %2305 = vperm.xlu0 %3592, %v2207_v3  }
  0xf8   : > { %v1098_v11 = vadd.f32 %v3084_v0, %v855_v8  ;;  %v3347_v12 = vpop.f32.mrb[6].mxu0  ;;  %3412 = vmatprep.mubr.msk.bf16.mxu1 %vm1293_vm2, %v1222_v4  ;;  %v2208_v4 = vld [vmem:[%s3904_s17 + $0x48] sm:$0xff]  ;;  %v3148_v8 = vunpack.c.l.bf16 %v3219_v58  ;;  %v3378_v18 = vpop.f32.mrb[4].mxu1 }
  0xf9   : > { %v1101_v15 = vadd.f32 %v3347_v12, %v3089_v2  ;;  %v858_v16 = vpop.f32.mrb[7].mxu0  ;;  %3413 = vmatmul.mubr.msk.bf16.vlgmr.msra.gmra.mrb[32].mxu1 %vm1293_vm2, %v1223_v1  ;;  %v1164_v21 = vmax.f32 %v1100_v7, 0.0  ;;  %v1193_v1 = vmax.f32 %v1129_v56, 0.0  ;;  %v3152_v2 = vunpack.c.l.bf16 %v3220_v51  ;;  %2310 = vperm.xlu1 %3593, %v2208_v4   ;;  %v983_v24 = vpop.f32.mrb[5].mxu1 }
  0xfa   : > { %v1099_v20 = vadd.f32 %v3085_v6, %v858_v16  ;;  %v1162_v27 = vmax.f32 %v1098_v11, 0.0  ;;  %v1191_v7 = vmax.f32 %v1127_v62, 0.0  ;;  %v3153_v12 = vunpack.c.h.bf16 %v3220_v51  ;;  %v3945_v16 = vld [vmem:[%s3888_s24 + $0x48] sm:$0xff]   ;;  %v3379_v30 = vpop.f32.mrb[6].mxu1 }
  0xfb   : > { %v1165_v22 = vmax.f32 %v1101_v15, 0.0  ;;  %v3941_v11 = vpack.c.bf16 %v1193_v1, %v1192_v55  ;;  %v3101_v15 = vunpack.c.h.bf16 %v3928_v42  ;;  %v986_v37 = vpop.f32.mrb[7].mxu1  ;;  %2315 = vperm.xlu0 %3592, %v2209_v25  }
  0xfc   : > { %v1163_v28 = vmax.f32 %v1099_v20, 0.0  ;;  %v3947_v17 = vpack.c.bf16 %v1191_v7, %v1190_v61  ;;  %v1131_v42 = vadd.f32 %v3149_v19, %v986_v37 }
  0xfd   : > { %v1225_v31 = vpack.c.bf16 %v1165_v22, %v1164_v21  ;;  %v3950_v22 = vld [vmem:[%s3888_s24 + $0x40] sm:$0xff]   ;;  %2320 = vperm.xlu1 %3593, %v2210_v26  }
  0xfe   : > { %v1224_v34 = vpack.c.bf16 %v1163_v28, %v1162_v27  ;;  %v3350_v35 = vpop.f32.mrb[8].mxu0  ;;  %v1195_v51 = vmax.f32 %v1131_v42, 0.0 }
  0xff   : > { %v1104_v40 = vadd.f32 %v3350_v35, %v3096_v23  ;;  %v871_v41 = vpop.f32.mrb[9].mxu0  ;;  %v1132_v23 = vadd.f32 %v3378_v18, %v3152_v2  ;;  %v3211_v2 = vld [vmem:[%s3888_s24 + $0x50] sm:$0xff]  }
 0x100   : > { %v1102_v47 = vadd.f32 %v3092_v29, %v871_v41  ;;  %v3351_v48 = vpop.f32.mrb[10].mxu0  ;;  %3416 = vmatprep.mubr.msk.bf16.mxu1 %vm1293_vm2, %v1224_v34  ;;  %v1130_v29 = vadd.f32 %v3148_v8, %v983_v24  ;;  %v3112_v34 = vunpack.c.l.bf16 %v3945_v16  ;;  %v3382_v62 = vpop.f32.mrb[8].mxu1  ;;  %v3223_v18 = vld [vmem:[%s3888_s24 + $0xb0] sm:$0xff]   ;;  %v3117_v37 = vunpack.c.h.bf16 %v3211_v2 }
 0x101   : > { %v1105_v52 = vadd.f32 %v3351_v48, %v3097_v32  ;;  %v874_v53 = vpop.f32.mrb[11].mxu0  ;;  %3417 = vmatmul.mubr.msk.bf16.gmra.mrb[36].mxu1 %vm1293_vm2, %v1225_v31  ;;  %v1168_v63 = vmax.f32 %v1104_v40, 0.0  ;;  %v3222_v31 = vld [vmem:[%s3888_s24 + $0xa8] sm:$0xff]   ;;  %v1196_v35 = vmax.f32 %v1132_v23, 0.0  ;;  %v3108_v40 = vunpack.c.l.bf16 %v3950_v22  ;;  %v999_v4 = vpop.f32.mrb[9].mxu1 }
 0x102   : > { %v1103_v59 = vadd.f32 %v3093_v36, %v874_v53  ;;  %v1166_v5 = vmax.f32 %v1102_v47, 0.0  ;;  %v1133_v36 = vadd.f32 %v3379_v30, %v3153_v12  ;;  %v1194_v41 = vmax.f32 %v1130_v29, 0.0  ;;  %v2211_v47 = vld [vmem:[%s3904_s17 + $0x60] sm:$0xff]  ;;  %v2212_v48 = vld [vmem:[%s3904_s17 + $0x68] sm:$0xff]  ;;  %v3383_v8 = vpop.f32.mrb[10].mxu1 }
 0x103   : > { %v1169_v0 = vmax.f32 %v1105_v52, 0.0  ;;  %v3160_v46 = vunpack.c.l.bf16 %v3222_v31  ;;  %v3156_v52 = vunpack.c.l.bf16 %v3221_v38  ;;  %v3161_v56 = vunpack.c.h.bf16 %v3222_v31  ;;  %2325 = vperm.xlu0 %3592, %v2211_v47   ;;  %2330 = vperm.xlu1 %3593, %v2212_v48  }
 0x104   : > { %v1167_v6 = vmax.f32 %v1103_v59, 0.0  ;;  %v1197_v45 = vmax.f32 %v1133_v36, 0.0  ;;  %v3109_v59 = vunpack.c.h.bf16 %v3950_v22  ;;  %v3967_v61 = vpack.c.bf16 %v1195_v51, %v1194_v41  ;;  %v3226_v51 = vld [vmem:[%s3888_s24 + $0xc8] sm:$0xff]  }
 0x105   : > { %v1227_v9 = vpack.c.bf16 %v1169_v0, %v1168_v63  ;;  %v3157_v63 = vunpack.c.h.bf16 %v3221_v38  ;;  %v1136_v3 = vadd.f32 %v3382_v62, %v3160_v46  ;;  %v1134_v7 = vadd.f32 %v3156_v52, %v999_v4  ;;  %v3214_v38 = vld [vmem:[%s3888_s24 + $0x68] sm:$0xff]  }
 0x106   : > { %v1226_v13 = vpack.c.bf16 %v1167_v6, %v1166_v5  ;;  %v3354_v14 = vpop.f32.mrb[12].mxu0  ;;  %v3963_v55 = vpack.c.bf16 %v1197_v45, %v1196_v35  ;;  %v3164_v30 = vunpack.c.l.bf16 %v3223_v18  ;;  %v3165_v41 = vunpack.c.h.bf16 %v3223_v18  ;;  %v3216_v18 = vld [vmem:[%s3888_s24 + $0x78] sm:$0xff]  }
 0x107   : > { %v1108_v20 = vadd.f32 %v3354_v14, %v3104_v54  ;;  %v887_v21 = vpop.f32.mrb[13].mxu0  ;;  %v3113_v54 = vunpack.c.h.bf16 %v3945_v16  ;;  %v1200_v14 = vmax.f32 %v1136_v3, 0.0  ;;  %v1002_v16 = vpop.f32.mrb[11].mxu1  ;;  %v3176_v4 = vunpack.c.l.bf16 %v3226_v51 }
 0x108   : > { %v1106_v27 = vadd.f32 %v3100_v60, %v887_v21  ;;  %v3355_v28 = vpop.f32.mrb[14].mxu0  ;;  %3420 = vmatprep.mubr.msk.bf16.mxu1 %vm1293_vm2, %v1226_v13  ;;  %v3212_v60 = vld [vmem:[%s3888_s24 + $0x58] sm:$0xff]   ;;  %v1198_v21 = vmax.f32 %v1134_v7, 0.0  ;;  %v1135_v22 = vadd.f32 %v3157_v63, %v1002_v16 }
 0x109   : > { %v1109_v32 = vadd.f32 %v3355_v28, %v3105_v10  ;;  %v890_v33 = vpop.f32.mrb[15].mxu0  ;;  %3421 = vmatmul.mubr.msk.bf16.gmra.mrb[40].mxu1 %vm1293_vm2, %v1227_v9  ;;  %v1172_v43 = vmax.f32 %v1108_v20, 0.0  ;;  %v3224_v9 = vld [vmem:[%s3888_s24 + $0xb8] sm:$0xff]   ;;  %v3120_v13 = vunpack.c.l.bf16 %v3212_v60  ;;  %v3116_v20 = vunpack.c.l.bf16 %v3211_v2 }
 0x10a   : > { %v1107_v39 = vadd.f32 %v3101_v15, %v890_v33  ;;  %v1170_v49 = vmax.f32 %v1106_v27, 0.0  ;;  %v1137_v15 = vadd.f32 %v3383_v8, %v3161_v56  ;;  %v3168_v26 = vunpack.c.l.bf16 %v3224_v9 }
 0x10b   : > { %v1173_v44 = vmax.f32 %v1109_v32, 0.0  ;;  %v1199_v29 = vmax.f32 %v1135_v22, 0.0  ;;  %v3121_v32 = vunpack.c.h.bf16 %v3212_v60 }
 0x10c   : > { %v1171_v50 = vmax.f32 %v1107_v39, 0.0  ;;  %v1201_v25 = vmax.f32 %v1137_v15, 0.0 }
 0x10d   : > { %v1229_v53 = vpack.c.bf16 %v1173_v44, %v1172_v43  ;;  %v3977_v39 = vpack.c.bf16 %v1199_v29, %v1198_v21  ;;  %v3213_v44 = vld [vmem:[%s3888_s24 + $0x60] sm:$0xff]  }
 0x10e   : > { %v1228_v57 = vpack.c.bf16 %v1171_v50, %v1170_v49  ;;  %v3358_v58 = vpop.f32.mrb[16].mxu0  ;;  %v3974_v33 = vpack.c.bf16 %v1201_v25, %v1200_v14  ;;  %v3124_v62 = vunpack.c.l.bf16 %v3213_v44  ;;  %v3125_v16 = vunpack.c.h.bf16 %v3213_v44 }
 0x10f   : > { %v1112_v0 = vadd.f32 %v3358_v58, %v3112_v34  ;;  %v903_v1 = vpop.f32.mrb[17].mxu0  ;;  %v3169_v34 = vunpack.c.h.bf16 %v3224_v9 }
 0x110   : > { %v1110_v5 = vadd.f32 %v3108_v40, %v903_v1  ;;  %v3359_v6 = vpop.f32.mrb[18].mxu0  ;;  %3424 = vmatprep.mubr.msk.bf16.mxu1 %vm1293_vm2, %v1228_v57  ;;  %v3386_v40 = vpop.f32.mrb[12].mxu1 }
 0x111   : > { %v1113_v10 = vadd.f32 %v3359_v6, %v3113_v54  ;;  %v906_v12 = vpop.f32.mrb[19].mxu0  ;;  %3425 = vmatmul.mubr.msk.bf16.gmra.mrb[44].mxu1 %vm1293_vm2, %v1229_v53  ;;  %v1176_v23 = vmax.f32 %v1112_v0, 0.0  ;;  %v1140_v45 = vadd.f32 %v3386_v40, %v3168_v26  ;;  %v1015_v46 = vpop.f32.mrb[13].mxu1  ;;  %v3128_v54 = vunpack.c.l.bf16 %v3214_v38  ;;  %v3227_v40 = vld [vmem:[%s3888_s24 + $0xd0] sm:$0xff]  }
 0x112   : > { %v1111_v19 = vadd.f32 %v3109_v59, %v906_v12  ;;  %v1174_v27 = vmax.f32 %v1110_v5, 0.0  ;;  %v1138_v49 = vadd.f32 %v3164_v30, %v1015_v46  ;;  %v3387_v50 = vpop.f32.mrb[14].mxu1  ;;  %v3225_v59 = vld [vmem:[%s3888_s24 + $0xc0] sm:$0xff]  }
 0x113   : > { %v1177_v24 = vmax.f32 %v1113_v10, 0.0  ;;  %v1204_v56 = vmax.f32 %v1140_v45, 0.0  ;;  %v1141_v57 = vadd.f32 %v3387_v50, %v3169_v34  ;;  %v1018_v58 = vpop.f32.mrb[15].mxu1  ;;  %v3172_v8 = vunpack.c.l.bf16 %v3225_v59 }
 0x114   : > { %v1175_v28 = vmax.f32 %v1111_v19, 0.0  ;;  %v1202_v63 = vmax.f32 %v1138_v49, 0.0  ;;  %v1139_v0 = vadd.f32 %v3165_v41, %v1018_v58  ;;  %v3129_v10 = vunpack.c.h.bf16 %v3214_v38 }
 0x115   : > { %v1231_v31 = vpack.c.bf16 %v1177_v24, %v1176_v23  ;;  %v1205_v3 = vmax.f32 %v1141_v57, 0.0  ;;  %v3173_v21 = vunpack.c.h.bf16 %v3225_v59  ;;  %v3215_v24 = vld [vmem:[%s3888_s24 + $0x70] sm:$0xff]  }
 0x116   : > { %v1230_v35 = vpack.c.bf16 %v1175_v28, %v1174_v27  ;;  %v3362_v36 = vpop.f32.mrb[20].mxu0  ;;  %v1203_v7 = vmax.f32 %v1139_v0, 0.0  ;;  %v3181_v0 = vunpack.c.h.bf16 %v3227_v40 }
 0x117   : > { %v1116_v42 = vadd.f32 %v3362_v36, %v3120_v13  ;;  %v919_v43 = vpop.f32.mrb[21].mxu0  ;;  %v3984_v12 = vpack.c.bf16 %v1205_v3, %v1204_v56  ;;  %v3177_v13 = vunpack.c.h.bf16 %v3226_v51 }
 0x118   : > { %v1114_v47 = vadd.f32 %v3116_v20, %v919_v43  ;;  %v3363_v48 = vpop.f32.mrb[22].mxu0  ;;  %3428 = vmatprep.mubr.msk.bf16.mxu1 %vm1293_vm2, %v1230_v35  ;;  %v3987_v19 = vpack.c.bf16 %v1203_v7, %v1202_v63  ;;  %v3390_v20 = vpop.f32.mrb[16].mxu1  ;;  %v3136_v35 = vunpack.c.l.bf16 %v3216_v18 }
 0x119   : > { %v1117_v52 = vadd.f32 %v3363_v48, %v3121_v32  ;;  %v922_v53 = vpop.f32.mrb[23].mxu0  ;;  %3429 = vmatmul.mubr.msk.bf16.gmra.mrb[48].mxu1 %vm1293_vm2, %v1231_v31  ;;  %v1180_v1 = vmax.f32 %v1116_v42, 0.0  ;;  %v1144_v25 = vadd.f32 %v3390_v20, %v3176_v4  ;;  %v1031_v26 = vpop.f32.mrb[17].mxu1  ;;  %v3228_v31 = vld [vmem:[%s3888_s24 + $0xd8] sm:$0xff]   ;;  %v3132_v42 = vunpack.c.l.bf16 %v3215_v24 }
 0x11a   : > { %v1115_v60 = vadd.f32 %v3117_v37, %v922_v53  ;;  %v1178_v5 = vmax.f32 %v1114_v47, 0.0  ;;  %v1142_v29 = vadd.f32 %v3172_v8, %v1031_v26  ;;  %v3391_v30 = vpop.f32.mrb[18].mxu1  ;;  %v3184_v48 = vunpack.c.l.bf16 %v3228_v31 }
 0x11b   : > { %v1181_v2 = vmax.f32 %v1117_v52, 0.0  ;;  %v1208_v36 = vmax.f32 %v1144_v25, 0.0  ;;  %v1145_v37 = vadd.f32 %v3391_v30, %v3177_v13  ;;  %v1034_v38 = vpop.f32.mrb[19].mxu1  ;;  %v3180_v52 = vunpack.c.l.bf16 %v3227_v40 }
 0x11c   : > { %v1179_v6 = vmax.f32 %v1115_v60, 0.0  ;;  %v1206_v43 = vmax.f32 %v1142_v29, 0.0  ;;  %v1143_v44 = vadd.f32 %v3173_v21, %v1034_v38  ;;  %v3185_v57 = vunpack.c.h.bf16 %v3228_v31  ;;  %v3394_v63 = vpop.f32.mrb[20].mxu1 }
 0x11d   : > { %v1233_v9 = vpack.c.bf16 %v1181_v2, %v1180_v1  ;;  %v1209_v47 = vmax.f32 %v1145_v37, 0.0  ;;  %v3133_v60 = vunpack.c.h.bf16 %v3215_v24  ;;  %v1148_v3 = vadd.f32 %v3394_v63, %v3184_v48  ;;  %v1047_v4 = vpop.f32.mrb[21].mxu1  ;;  %v3231_v48 = vld [vmem:[%s3888_s24 + $0xf0] sm:$0xff]  }
 0x11e   : > { %v1232_v14 = vpack.c.bf16 %v1179_v6, %v1178_v5  ;;  %v3366_v15 = vpop.f32.mrb[24].mxu0  ;;  %v1207_v51 = vmax.f32 %v1143_v44, 0.0  ;;  %v1146_v7 = vadd.f32 %v3180_v52, %v1047_v4  ;;  %v3395_v8 = vpop.f32.mrb[22].mxu1  ;;  %v3232_v44 = vld [vmem:[%s3888_s24 + $0xf8] sm:$0xff]   ;;  %v3197_v63 = vunpack.c.h.bf16 %v3231_v48 }
 0x11f   : > { %v1120_v22 = vadd.f32 %v3366_v15, %v3128_v54  ;;  %v935_v23 = vpop.f32.mrb[25].mxu0  ;;  %v3137_v54 = vunpack.c.h.bf16 %v3216_v18  ;;  %v3994_v56 = vpack.c.bf16 %v1209_v47, %v1208_v36  ;;  %v1149_v15 = vadd.f32 %v3395_v8, %v3185_v57  ;;  %v3229_v18 = vld [vmem:[%s3888_s24 + $0xe0] sm:$0xff]  }
 0x120   : > { %v1118_v27 = vadd.f32 %v3124_v62, %v935_v23  ;;  %v3367_v28 = vpop.f32.mrb[26].mxu0  ;;  %3432 = vmatprep.mubr.msk.bf16.mxu1 %vm1293_vm2, %v1232_v14  ;;  %v3996_v62 = vpack.c.bf16 %v1207_v51, %v1206_v43  ;;  %v1212_v14 = vmax.f32 %v1148_v3, 0.0  ;;  %v1210_v21 = vmax.f32 %v1146_v7, 0.0 }
 0x121   : > { %v1121_v32 = vadd.f32 %v3367_v28, %v3129_v10  ;;  %v938_v34 = vpop.f32.mrb[27].mxu0  ;;  %3433 = vmatmul.mubr.msk.bf16.gmra.mrb[52].mxu1 %vm1293_vm2, %v1233_v9  ;;  %v1184_v45 = vmax.f32 %v1120_v22, 0.0  ;;  %v3230_v9 = vld [vmem:[%s3888_s24 + $0xe8] sm:$0xff]   ;;  %v1213_v25 = vmax.f32 %v1149_v15, 0.0  ;;  %v3188_v30 = vunpack.c.l.bf16 %v3229_v18  ;;  %v2222_v15 = vld [vmem:[%s3904_s17 + $0xb8] sm:$0xff]  ;;  %s3699_s24 = smov [#allocation2]  }
 0x122   : > { %v1119_v41 = vadd.f32 %v3125_v16, %v938_v34  ;;  %v1182_v49 = vmax.f32 %v1118_v27, 0.0  ;;  %v1050_v16 = vpop.f32.mrb[23].mxu1  ;;  %v3192_v26 = vunpack.c.l.bf16 %v3230_v9  ;;  %v3193_v34 = vunpack.c.h.bf16 %v3230_v9  ;;  %s3638_s23 = sshll.u32 %s3699_s24, 4  ;;  %s3639_s23 = int_to_ptr.vmem [resolvable:$false] %s3638_s23 }
 0x123   : > { %v1185_v46 = vmax.f32 %v1121_v32, 0.0  ;;  %v1147_v22 = vadd.f32 %v3181_v0, %v1050_v16  ;;  %v4002_v32 = vpack.c.bf16 %v1213_v25, %v1212_v14  ;;  %v3398_v37 = vpop.f32.mrb[24].mxu1  ;;  %v3189_v38 = vunpack.c.h.bf16 %v3229_v18  ;;  %v2221_v14 = vld [vmem:[%s3904_s17 + $0xb0] sm:$0xff]  ;;  %v2224_v16 = vld [vmem:[%s3904_s17 + $0xc8] sm:$0xff]  ;;  %v2231_v25 = vld [vmem:[%s3904_s17 + $0x100] sm:$0xff]  ;;  %s3640_s25 = scalar_lea.vmem %s3639_s23, 128  ;;  %p3641_p0 = scmp.lt.s32.totalorder %s4397_s13, %s3639_s23 }
 0x124   : > { %v1183_v50 = vmax.f32 %v1119_v41, 0.0  ;;  %v1152_v40 = vadd.f32 %v3398_v37, %v3192_v26  ;;  %v1063_v41 = vpop.f32.mrb[25].mxu1  ;;  %v3200_v52 = vunpack.c.l.bf16 %v3232_v44  ;;  %v2225_v18 = vld [vmem:[%s3904_s17 + $0xd0] sm:$0xff]  ;;  %v2232_v26 = vld [vmem:[%s3904_s17 + $0x108] sm:$0xff]  ;;  %p3642_p1 = scmp.lt.s32.totalorder %s3640_s25, %s3634_s21 }
 0x125   : > { %v1235_v53 = vpack.c.bf16 %v1185_v46, %v1184_v45  ;;  %v1211_v29 = vmax.f32 %v1147_v22, 0.0  ;;  %v3399_v43 = vpop.f32.mrb[26].mxu1  ;;  %v2228_v22 = vld [vmem:[%s3904_s17 + $0xe8] sm:$0xff]  ;;  %v2241_v37 = vld [vmem:[%s3904_s17 + $0x150] sm:$0xff] }
 0x126   : > { %v1234_v58 = vpack.c.bf16 %v1183_v50, %v1182_v49  ;;  %v3370_v59 = vpop.f32.mrb[28].mxu0  ;;  %v1216_v45 = vmax.f32 %v1152_v40, 0.0  ;;  %v1153_v46 = vadd.f32 %v3399_v43, %v3193_v34  ;;  %v1066_v47 = vpop.f32.mrb[27].mxu1  ;;  %v2240_v34 = vld [vmem:[%s3904_s17 + $0x148] sm:$0xff]  ;;  %v2257_v43 = vld [vmem:[%s3904_s17 + $0x1d0] sm:$0xff]  ;;  %p3643_p2 = por %p3642_p1, %p3641_p0 }
 0x127   : > { %v1124_v1 = vadd.f32 %v3370_v59, %v3136_v35  ;;  %v951_v2 = vpop.f32.mrb[29].mxu0  ;;  %v1248_v36 = vpack.c.bf16 %v1211_v29, %v1210_v21  ;;  %v1151_v50 = vadd.f32 %v3189_v38, %v1066_v47  ;;  %v2227_v21 = vld [vmem:[%s3904_s17 + $0xe0] sm:$0xff]  ;;  %v2256_v40 = vld [vmem:[%s3904_s17 + $0x1c8] sm:$0xff] }
 0x128   : > { %v1122_v5 = vadd.f32 %v3132_v42, %v951_v2  ;;  %v3371_v6 = vpop.f32.mrb[30].mxu0  ;;  %3436 = vmatprep.mubr.msk.bf16.mxu1 %vm1293_vm2, %v1234_v58  ;;  %v1150_v42 = vadd.f32 %v3188_v30, %v1063_v41  ;;  %v1217_v51 = vmax.f32 %v1153_v46, 0.0  ;;  %v3201_v58 = vunpack.c.h.bf16 %v3232_v44  ;;  %v2235_v29 = vld [vmem:[%s3904_s17 + $0x120] sm:$0xff]  ;;  %v2236_v30 = vld [vmem:[%s3904_s17 + $0x128] sm:$0xff]  ;;  %v2249_v41 = vld [vmem:[%s3904_s17 + $0x190] sm:$0xff]  ;;  %p3644_p3 = pnand %p3643_p2, %p3637_p13 }
 0x129   : > { %v1125_v10 = vadd.f32 %v3371_v6, %v3137_v54  ;;  %v954_v13 = vpop.f32.mrb[31].mxu0  ;;  %3437 = vmatmul.mubr.msk.bf16.gmra.mrb[56].mxu1 %vm1293_vm2, %v1235_v53  ;;  %v1188_v23 = vmax.f32 %v1124_v1, 0.0  ;;  %v1215_v53 = vmax.f32 %v1151_v50, 0.0  ;;  %v3196_v54 = vunpack.c.l.bf16 %v3231_v48  ;;  %v2255_v38 = vld [vmem:[%s3904_s17 + $0x1c0] sm:$0xff]  ;;  %v2250_v44 = vld [vmem:[%s3904_s17 + $0x198] sm:$0xff]  ;;  %v2244_v48 = vld [vmem:[%s3904_s17 + $0x168] sm:$0xff] }
 0x12a   : > { %v1123_v20 = vadd.f32 %v3133_v60, %v954_v13  ;;  %v1186_v27 = vmax.f32 %v1122_v5, 0.0  ;;  %v1214_v49 = vmax.f32 %v1150_v42, 0.0  ;;  %v1251_v57 = vpack.c.bf16 %v1217_v51, %v1216_v45  ;;  %v3402_v60 = vpop.f32.mrb[28].mxu1  ;;  %v2242_v42 = vld [vmem:[%s3904_s17 + $0x158] sm:$0xff]  ;;  %v2243_v45 = vld [vmem:[%s3904_s17 + $0x160] sm:$0xff]  ;;  %v2252_v50 = vld [vmem:[%s3904_s17 + $0x1a8] sm:$0xff] }
 0x12b   : > { %v1189_v24 = vmax.f32 %v1125_v10, 0.0  ;;  %v1156_v0 = vadd.f32 %v3402_v60, %v3200_v52  ;;  %v1079_v1 = vpop.f32.mrb[29].mxu1  ;;  %v2258_v46 = vld [vmem:[%s3904_s17 + $0x1d8] sm:$0xff]  ;;  %v2251_v47 = vld [vmem:[%s3904_s17 + $0x1a0] sm:$0xff]  ;;  %v2245_v51 = vld [vmem:[%s3904_s17 + $0x170] sm:$0xff] }
 0x12c   : > { %v1187_v28 = vmax.f32 %v1123_v20, 0.0  ;;  %v1250_v59 = vpack.c.bf16 %v1215_v53, %v1214_v49  ;;  %v1154_v2 = vadd.f32 %v3196_v54, %v1079_v1  ;;  %v3403_v3 = vpop.f32.mrb[30].mxu1  ;;  %v2226_v20 = vld [vmem:[%s3904_s17 + $0xd8] sm:$0xff]  ;;  %v2259_v49 = vld [vmem:[%s3904_s17 + $0x1e0] sm:$0xff]  ;;  %v2260_v52 = vld [vmem:[%s3904_s17 + $0x1e8] sm:$0xff] }
 0x12d   : > { %v1237_v31 = vpack.c.bf16 %v1189_v24, %v1188_v23  ;;  %v1157_v4 = vadd.f32 %v3403_v3, %v3201_v58  ;;  %v1082_v5 = vpop.f32.mrb[31].mxu1  ;;  %v2229_v23 = vld [vmem:[%s3904_s17 + $0xf0] sm:$0xff]  ;;  %v2230_v24 = vld [vmem:[%s3904_s17 + $0xf8] sm:$0xff] }
 0x12e   : > { %v1236_v35 = vpack.c.bf16 %v1187_v28, %v1186_v27  ;;  %v1218_v6 = vmax.f32 %v1154_v2, 0.0  ;;  %v1155_v7 = vadd.f32 %v3197_v63, %v1082_v5  ;;  %v2233_v27 = vld [vmem:[%s3904_s17 + $0x110] sm:$0xff]  ;;  %v2234_v28 = vld [vmem:[%s3904_s17 + $0x118] sm:$0xff]  ;;  %v4088_v63 = vld [vmem:[%s4442_s5] ss:$0 sm:$0xff] }
 0x12f   : > { %v1221_v8 = vmax.f32 %v1157_v4, 0.0  ;;  %v2238_v53 = vld [vmem:[%s3904_s17 + $0x138] sm:$0xff]  ;;  %v2253_v54 = vld [vmem:[%s3904_s17 + $0x1b0] sm:$0xff] }
 0x130   : > { %3440 = vmatprep.mubr.msk.bf16.mxu1 %vm1293_vm2, %v1236_v35  ;;  %v1219_v9 = vmax.f32 %v1155_v7, 0.0  ;;  %v2247_v35 = vld [vmem:[%s3904_s17 + $0x180] sm:$0xff]  ;;  %v2261_v58 = vld [vmem:[%s3904_s17 + $0x1f0] sm:$0xff]  ;;  %v2262_v60 = vld [vmem:[%s3904_s17 + $0x1f8] sm:$0xff] }
 0x131   : > { %3441 = vmatmul.mubr.msk.bf16.gmra.mrb[60].mxu1 %vm1293_vm2, %v1237_v31  ;;  %v2237_v31 = vld [vmem:[%s3904_s17 + $0x130] sm:$0xff] }
 0x132   : > { %3444 = vmatprep.mubr.msk.bf16.mxu1 %vm1293_vm2, %v3947_v17  ;;  %v1220_v17 = vmax.f32 %v1156_v0, 0.0  ;;  %v1252_v13 = vpack.c.bf16 %v1219_v9, %v1218_v6 }
 0x134   : > { %v1253_v10 = vpack.c.bf16 %v1221_v8, %v1220_v17 }
 0x139   : > { %3445 = vmatmul.mubr.msk.bf16.gmra.mrb[64].mxu1 %vm1293_vm2, %v3941_v11  ;;  %v2213_v11 = vld [vmem:[%s3904_s17 + $0x70] sm:$0xff] }
 0x13a   : > { %3448 = vmatprep.mubr.msk.bf16.mxu1 %vm1293_vm2, %v3967_v61  ;;  %2335 = vperm.xlu0 %3592, %v2213_v11   ;;  %v2214_v61 = vld [vmem:[%s3904_s17 + $0x78] sm:$0xff] }
 0x13b   : > { %2340 = vperm.xlu1 %3593, %v2214_v61  }
 0x141   : > { %3449 = vmatmul.mubr.msk.bf16.gmra.mrb[68].mxu1 %vm1293_vm2, %v3963_v55  ;;  %v2215_v55 = vld [vmem:[%s3904_s17 + $0x80] sm:$0xff] }
 0x142   : > { %3452 = vmatprep.mubr.msk.bf16.mxu1 %vm1293_vm2, %v3977_v39  ;;  %2345 = vperm.xlu0 %3592, %v2215_v55   ;;  %v2217_v39 = vld [vmem:[%s3904_s17 + $0x90] sm:$0xff] }
 0x146   : > { %2355 = vperm.xlu0 %3592, %v2217_v39  }
 0x149   : > { %3453 = vmatmul.mubr.msk.bf16.gmra.mrb[72].mxu1 %vm1293_vm2, %v3974_v33  ;;  %v2216_v33 = vld [vmem:[%s3904_s17 + $0x88] sm:$0xff] }
 0x14a   : > { %3456 = vmatprep.mubr.msk.bf16.mxu1 %vm1293_vm2, %v3987_v19  ;;  %2350 = vperm.xlu1 %3593, %v2216_v33   ;;  %v2218_v19 = vld [vmem:[%s3904_s17 + $0x98] sm:$0xff] }
 0x14e   : > { %2360 = vperm.xlu1 %3593, %v2218_v19  }
 0x151   : > { %3457 = vmatmul.mubr.msk.bf16.gmra.mrb[76].mxu1 %vm1293_vm2, %v3984_v12  ;;  %v2219_v12 = vld [vmem:[%s3904_s17 + $0xa0] sm:$0xff] }
 0x152   : > { %3460 = vmatprep.mubr.msk.bf16.mxu1 %vm1293_vm2, %v3996_v62  ;;  %2365 = vperm.xlu0 %3592, %v2219_v12   ;;  %v2220_v62 = vld [vmem:[%s3904_s17 + $0xa8] sm:$0xff] }
 0x153   : > { %2370 = vperm.xlu1 %3593, %v2220_v62  }
 0x156   : > { %2375 = vperm.xlu0 %3592, %v2221_v14  }
 0x157   : > { %2380 = vperm.xlu1 %3593, %v2222_v15  }
 0x159   : > { %3461 = vmatmul.mubr.msk.bf16.gmra.mrb[80].mxu1 %vm1293_vm2, %v3994_v56  ;;  %v2223_v56 = vld [vmem:[%s3904_s17 + $0xc0] sm:$0xff] }
 0x15a   : > { %3464 = vmatprep.mubr.msk.bf16.mxu1 %vm1293_vm2, %v1248_v36  ;;  %2385 = vperm.xlu0 %3592, %v2223_v56   ;;  %v2248_v36 = vld [vmem:[%s3904_s17 + $0x188] sm:$0xff] }
 0x15b   : > { %2390 = vperm.xlu1 %3593, %v2224_v16  }
 0x15e   : > { %2395 = vperm.xlu0 %3592, %v2225_v18  }
 0x15f   : > { %2400 = vperm.xlu1 %3593, %v2226_v20  }
 0x161   : > { %3465 = vmatmul.mubr.msk.bf16.gmra.mrb[84].mxu1 %vm1293_vm2, %v4002_v32  ;;  %v2239_v32 = vld [vmem:[%s3904_s17 + $0x140] sm:$0xff] }
 0x162   : > { %3468 = vmatprep.mubr.msk.bf16.mxu1 %vm1293_vm2, %v1250_v59  ;;  %2405 = vperm.xlu0 %3592, %v2227_v21   ;;  %v2254_v59 = vld [vmem:[%s3904_s17 + $0x1b8] sm:$0xff] }
 0x163   : > { %2410 = vperm.xlu1 %3593, %v2228_v22  }
 0x166   : > { %2415 = vperm.xlu0 %3592, %v2229_v23  }
 0x167   : > { %2420 = vperm.xlu1 %3593, %v2230_v24  }
 0x169   : > { %3469 = vmatmul.mubr.msk.bf16.gmra.mrb[88].mxu1 %vm1293_vm2, %v1251_v57  ;;  %v2246_v57 = vld [vmem:[%s3904_s17 + $0x178] sm:$0xff] }
 0x16a   : > { %3472 = vmatprep.mubr.msk.bf16.mxu1 %vm1293_vm2, %v1252_v13  ;;  %2425 = vperm.xlu0 %3592, %v2231_v25  }
 0x16b   : > { %2430 = vperm.xlu1 %3593, %v2232_v26  }
 0x16e   : > { %2435 = vperm.xlu0 %3592, %v2233_v27  }
 0x16f   : > { %2440 = vperm.xlu1 %3593, %v2234_v28  }
 0x171   : > { %3473 = vmatmul.mubr.msk.bf16.gmra.mrb[92].mxu1 %vm1293_vm2, %v1253_v10 }
 0x172   : > { %2445 = vperm.xlu0 %3592, %v2235_v29  }
 0x173   : > { %2450 = vperm.xlu1 %3593, %v2236_v30  }
 0x176   : > { %2455 = vperm.xlu0 %3592, %v2237_v31  }
 0x177   : > { %2465 = vperm.xlu1 %3593, %v2239_v32  }
 0x17a   : > { %2470 = vperm.xlu0 %3592, %v2240_v34  }
 0x17b   : > { %2505 = vperm.xlu1 %3593, %v2247_v35  }
 0x17e   : > { %2510 = vperm.xlu0 %3592, %v2248_v36  }
 0x17f   : > { %2475 = vperm.xlu1 %3593, %v2241_v37  }
 0x182   : > { %2545 = vperm.xlu0 %3592, %v2255_v38  }
 0x183   : > { %2550 = vperm.xlu1 %3593, %v2256_v40  }
 0x186   : > { %2515 = vperm.xlu0 %3592, %v2249_v41  }
 0x187   : > { %2480 = vperm.xlu1 %3593, %v2242_v42  }
 0x18a   : > { %2555 = vperm.xlu0 %3592, %v2257_v43  }
 0x18b   : > { %2520 = vperm.xlu1 %3593, %v2250_v44  }
 0x18e   : > { %2485 = vperm.xlu0 %3592, %v2243_v45  }
 0x18f   : > { %2560 = vperm.xlu1 %3593, %v2258_v46  }
 0x192   : > { %2525 = vperm.xlu0 %3592, %v2251_v47  }
 0x193   : > { %2490 = vperm.xlu1 %3593, %v2244_v48  }
 0x196   : > { %2565 = vperm.xlu0 %3592, %v2259_v49  }
 0x197   : > { %2530 = vperm.xlu1 %3593, %v2252_v50  }
 0x19a   : > { %2495 = vperm.xlu0 %3592, %v2245_v51  }
 0x19b   : > { %2570 = vperm.xlu1 %3593, %v2260_v52  }
 0x19e   : > { %2460 = vperm.xlu0 %3592, %v2238_v53  }
 0x19f   : > { %2535 = vperm.xlu1 %3593, %v2253_v54  }
 0x1a2   : > { %2500 = vperm.xlu0 %3592, %v2246_v57  }
 0x1a3   : > { %2575 = vperm.xlu1 %3593, %v2261_v58  }
 0x1a6   : > { %2540 = vperm.xlu0 %3592, %v2254_v59  }
 0x1a7   : > { %2580 = vperm.xlu1 %3593, %v2262_v60  }
 0x1cc   : > { %v3414_v0 = vpop.f32.mrb[32].mxu1 }
 0x1cd   : > { %v1433_v1 = vadd.f32 %v3414_v0, %v4088_v63  ;;  %v1424_v2 = vpop.f32.mrb[33].mxu1 }
 0x1ce   : > { %v1425_v3 = vadd.f32 %v4088_v63, %v1424_v2  ;;  %v3415_v17 = vpop.f32.mrb[34].mxu1 }
 0x1cf   : > { %v1436_v4 = vadd.f32 %v3415_v17, %v4088_v63  ;;  %v1427_v5 = vpop.f32.mrb[35].mxu1  ;;  %v1681_v7 = vmax.f32 %v1433_v1, 0.0 }
 0x1d0   : > { %v1428_v6 = vadd.f32 %v4088_v63, %v1427_v5  ;;  %v1679_v9 = vmax.f32 %v1425_v3, 0.0 }
 0x1d1   : > { %v1682_v8 = vmax.f32 %v1436_v4, 0.0 }
 0x1d2   : > { %v1680_v10 = vmax.f32 %v1428_v6, 0.0 }
 0x1d3   : > { %v1744_v13 = vpack.c.bf16 %v1682_v8, %v1681_v7 }
 0x1d4   : > { %v1743_v11 = vpack.c.bf16 %v1680_v10, %v1679_v9  ;;  %v3418_v61 = vpop.f32.mrb[36].mxu1 }
 0x1d5   : > { %v1449_v55 = vadd.f32 %v3418_v61, %v4088_v63  ;;  %v1440_v33 = vpop.f32.mrb[37].mxu1 }
 0x1d6   : > { %v1441_v39 = vadd.f32 %v4088_v63, %v1440_v33  ;;  %v3419_v19 = vpop.f32.mrb[38].mxu1  ;;  %3484 = vmatprep.mubr.msk.bf16.mxu0 %vm1293_vm2, %v1743_v11 }
 0x1d7   : > { %v1452_v12 = vadd.f32 %v3419_v19, %v4088_v63  ;;  %v1443_v62 = vpop.f32.mrb[39].mxu1  ;;  %3485 = vmatmul.mubr.msk.bf16.vlgmr.msra.gmra.mrb[32].mxu0 %vm1293_vm2, %v1744_v13  ;;  %v1685_v15 = vmax.f32 %v1449_v55, 0.0 }
 0x1d8   : > { %v1444_v14 = vadd.f32 %v4088_v63, %v1443_v62  ;;  %v1683_v16 = vmax.f32 %v1441_v39, 0.0 }
 0x1d9   : > { %v1686_v56 = vmax.f32 %v1452_v12, 0.0 }
 0x1da   : > { %v1684_v18 = vmax.f32 %v1444_v14, 0.0 }
 0x1db   : > { %v1746_v20 = vpack.c.bf16 %v1686_v56, %v1685_v15 }
 0x1dc   : > { %v1745_v21 = vpack.c.bf16 %v1684_v18, %v1683_v16  ;;  %v3422_v22 = vpop.f32.mrb[40].mxu1 }
 0x1dd   : > { %v1465_v23 = vadd.f32 %v3422_v22, %v4088_v63  ;;  %v1456_v24 = vpop.f32.mrb[41].mxu1 }
 0x1de   : > { %v1457_v25 = vadd.f32 %v4088_v63, %v1456_v24  ;;  %v3423_v26 = vpop.f32.mrb[42].mxu1  ;;  %3488 = vmatprep.mubr.msk.bf16.mxu0 %vm1293_vm2, %v1745_v21 }
 0x1df   : > { %v1468_v27 = vadd.f32 %v3423_v26, %v4088_v63  ;;  %v1459_v28 = vpop.f32.mrb[43].mxu1  ;;  %3489 = vmatmul.mubr.msk.bf16.gmra.mrb[36].mxu0 %vm1293_vm2, %v1746_v20  ;;  %v1689_v30 = vmax.f32 %v1465_v23, 0.0 }
 0x1e0   : > { %v1460_v29 = vadd.f32 %v4088_v63, %v1459_v28  ;;  %v1687_v32 = vmax.f32 %v1457_v25, 0.0 }
 0x1e1   : > { %v1690_v31 = vmax.f32 %v1468_v27, 0.0 }
 0x1e2   : > { %v1688_v34 = vmax.f32 %v1460_v29, 0.0 }
 0x1e3   : > { %v1748_v35 = vpack.c.bf16 %v1690_v31, %v1689_v30 }
 0x1e4   : > { %v1747_v36 = vpack.c.bf16 %v1688_v34, %v1687_v32  ;;  %v3426_v37 = vpop.f32.mrb[44].mxu1 }
 0x1e5   : > { %v1481_v38 = vadd.f32 %v3426_v37, %v4088_v63  ;;  %v1472_v40 = vpop.f32.mrb[45].mxu1 }
 0x1e6   : > { %v1473_v41 = vadd.f32 %v4088_v63, %v1472_v40  ;;  %v3427_v42 = vpop.f32.mrb[46].mxu1  ;;  %3492 = vmatprep.mubr.msk.bf16.mxu0 %vm1293_vm2, %v1747_v36 }
 0x1e7   : > { %v1484_v43 = vadd.f32 %v3427_v42, %v4088_v63  ;;  %v1475_v44 = vpop.f32.mrb[47].mxu1  ;;  %3493 = vmatmul.mubr.msk.bf16.gmra.mrb[40].mxu0 %vm1293_vm2, %v1748_v35  ;;  %v1693_v46 = vmax.f32 %v1481_v38, 0.0 }
 0x1e8   : > { %v1476_v45 = vadd.f32 %v4088_v63, %v1475_v44  ;;  %v1691_v48 = vmax.f32 %v1473_v41, 0.0 }
 0x1e9   : > { %v1694_v47 = vmax.f32 %v1484_v43, 0.0 }
 0x1ea   : > { %v1692_v49 = vmax.f32 %v1476_v45, 0.0 }
 0x1eb   : > { %v1750_v50 = vpack.c.bf16 %v1694_v47, %v1693_v46 }
 0x1ec   : > { %v1749_v51 = vpack.c.bf16 %v1692_v49, %v1691_v48  ;;  %v3430_v52 = vpop.f32.mrb[48].mxu1 }
 0x1ed   : > { %v1497_v53 = vadd.f32 %v3430_v52, %v4088_v63  ;;  %v1488_v54 = vpop.f32.mrb[49].mxu1 }
 0x1ee   : > { %v1489_v57 = vadd.f32 %v4088_v63, %v1488_v54  ;;  %v3431_v58 = vpop.f32.mrb[50].mxu1  ;;  %3496 = vmatprep.mubr.msk.bf16.mxu0 %vm1293_vm2, %v1749_v51 }
 0x1ef   : > { %v1500_v59 = vadd.f32 %v3431_v58, %v4088_v63  ;;  %v1491_v60 = vpop.f32.mrb[51].mxu1  ;;  %3497 = vmatmul.mubr.msk.bf16.gmra.mrb[44].mxu0 %vm1293_vm2, %v1750_v50  ;;  %v1697_v1 = vmax.f32 %v1497_v53, 0.0 }
 0x1f0   : > { %v1492_v0 = vadd.f32 %v4088_v63, %v1491_v60  ;;  %v1695_v3 = vmax.f32 %v1489_v57, 0.0 }
 0x1f1   : > { %v1698_v2 = vmax.f32 %v1500_v59, 0.0 }
 0x1f2   : > { %v1696_v17 = vmax.f32 %v1492_v0, 0.0 }
 0x1f3   : > { %v1752_v4 = vpack.c.bf16 %v1698_v2, %v1697_v1 }
 0x1f4   : > { %v1751_v5 = vpack.c.bf16 %v1696_v17, %v1695_v3  ;;  %v3434_v6 = vpop.f32.mrb[52].mxu1 }
 0x1f5   : > { %v1513_v7 = vadd.f32 %v3434_v6, %v4088_v63  ;;  %v1504_v8 = vpop.f32.mrb[53].mxu1 }
 0x1f6   : > { %v1505_v9 = vadd.f32 %v4088_v63, %v1504_v8  ;;  %v3435_v10 = vpop.f32.mrb[54].mxu1  ;;  %3500 = vmatprep.mubr.msk.bf16.mxu0 %vm1293_vm2, %v1751_v5 }
 0x1f7   : > { %v1516_v13 = vadd.f32 %v3435_v10, %v4088_v63  ;;  %v1507_v11 = vpop.f32.mrb[55].mxu1  ;;  %3501 = vmatmul.mubr.msk.bf16.gmra.mrb[48].mxu0 %vm1293_vm2, %v1752_v4  ;;  %v1701_v55 = vmax.f32 %v1513_v7, 0.0 }
 0x1f8   : > { %v1508_v61 = vadd.f32 %v4088_v63, %v1507_v11  ;;  %v1699_v39 = vmax.f32 %v1505_v9, 0.0 }
 0x1f9   : > { %v1702_v33 = vmax.f32 %v1516_v13, 0.0 }
 0x1fa   : > { %v1700_v19 = vmax.f32 %v1508_v61, 0.0 }
 0x1fb   : > { %v1754_v12 = vpack.c.bf16 %v1702_v33, %v1701_v55 }
 0x1fc   : > { %v1753_v62 = vpack.c.bf16 %v1700_v19, %v1699_v39  ;;  %v3438_v14 = vpop.f32.mrb[56].mxu1 }
 0x1fd   : > { %v1529_v15 = vadd.f32 %v3438_v14, %v4088_v63  ;;  %v1520_v56 = vpop.f32.mrb[57].mxu1 }
 0x1fe   : > { %v1521_v16 = vadd.f32 %v4088_v63, %v1520_v56  ;;  %v3439_v18 = vpop.f32.mrb[58].mxu1  ;;  %3504 = vmatprep.mubr.msk.bf16.mxu0 %vm1293_vm2, %v1753_v62 }
 0x1ff   : > { %v1532_v20 = vadd.f32 %v3439_v18, %v4088_v63  ;;  %v1523_v21 = vpop.f32.mrb[59].mxu1  ;;  %3505 = vmatmul.mubr.msk.bf16.gmra.mrb[52].mxu0 %vm1293_vm2, %v1754_v12  ;;  %v1705_v23 = vmax.f32 %v1529_v15, 0.0 }
 0x200   : > { %v1524_v22 = vadd.f32 %v4088_v63, %v1523_v21  ;;  %v1703_v25 = vmax.f32 %v1521_v16, 0.0 }
 0x201   : > { %v1706_v24 = vmax.f32 %v1532_v20, 0.0 }
 0x202   : > { %v1704_v26 = vmax.f32 %v1524_v22, 0.0 }
 0x203   : > { %v1756_v27 = vpack.c.bf16 %v1706_v24, %v1705_v23 }
 0x204   : > { %v1755_v28 = vpack.c.bf16 %v1704_v26, %v1703_v25  ;;  %v3442_v29 = vpop.f32.mrb[60].mxu1 }
 0x205   : > { %v1545_v30 = vadd.f32 %v3442_v29, %v4088_v63  ;;  %v1536_v31 = vpop.f32.mrb[61].mxu1 }
 0x206   : > { %v1537_v32 = vadd.f32 %v4088_v63, %v1536_v31  ;;  %v3443_v34 = vpop.f32.mrb[62].mxu1  ;;  %3508 = vmatprep.mubr.msk.bf16.mxu0 %vm1293_vm2, %v1755_v28 }
 0x207   : > { %v1548_v35 = vadd.f32 %v3443_v34, %v4088_v63  ;;  %v1539_v36 = vpop.f32.mrb[63].mxu1  ;;  %3509 = vmatmul.mubr.msk.bf16.gmra.mrb[56].mxu0 %vm1293_vm2, %v1756_v27  ;;  %v1709_v38 = vmax.f32 %v1545_v30, 0.0 }
 0x208   : > { %v1540_v37 = vadd.f32 %v4088_v63, %v1539_v36  ;;  %v1707_v41 = vmax.f32 %v1537_v32, 0.0 }
 0x209   : > { %v1710_v40 = vmax.f32 %v1548_v35, 0.0 }
 0x20a   : > { %v1708_v42 = vmax.f32 %v1540_v37, 0.0 }
 0x20b   : > { %v1758_v43 = vpack.c.bf16 %v1710_v40, %v1709_v38 }
 0x20c   : > { %v1757_v44 = vpack.c.bf16 %v1708_v42, %v1707_v41  ;;  %v3446_v45 = vpop.f32.mrb[64].mxu1 }
 0x20d   : > { %v1561_v46 = vadd.f32 %v3446_v45, %v4088_v63  ;;  %v1552_v47 = vpop.f32.mrb[65].mxu1 }
 0x20e   : > { %v1553_v48 = vadd.f32 %v4088_v63, %v1552_v47  ;;  %v3447_v49 = vpop.f32.mrb[66].mxu1  ;;  %3512 = vmatprep.mubr.msk.bf16.mxu0 %vm1293_vm2, %v1757_v44 }
 0x20f   : > { %v1564_v50 = vadd.f32 %v3447_v49, %v4088_v63  ;;  %v1555_v51 = vpop.f32.mrb[67].mxu1  ;;  %3513 = vmatmul.mubr.msk.bf16.gmra.mrb[60].mxu0 %vm1293_vm2, %v1758_v43  ;;  %v1713_v53 = vmax.f32 %v1561_v46, 0.0 }
 0x210   : > { %v1556_v52 = vadd.f32 %v4088_v63, %v1555_v51  ;;  %v1711_v57 = vmax.f32 %v1553_v48, 0.0 }
 0x211   : > { %v1714_v54 = vmax.f32 %v1564_v50, 0.0 }
 0x212   : > { %v1712_v58 = vmax.f32 %v1556_v52, 0.0 }
 0x213   : > { %v1760_v59 = vpack.c.bf16 %v1714_v54, %v1713_v53 }
 0x214   : > { %v1759_v60 = vpack.c.bf16 %v1712_v58, %v1711_v57  ;;  %v3450_v0 = vpop.f32.mrb[68].mxu1 }
 0x215   : > { %v1577_v1 = vadd.f32 %v3450_v0, %v4088_v63  ;;  %v1568_v2 = vpop.f32.mrb[69].mxu1 }
 0x216   : > { %v1569_v3 = vadd.f32 %v4088_v63, %v1568_v2  ;;  %v3451_v17 = vpop.f32.mrb[70].mxu1  ;;  %3516 = vmatprep.mubr.msk.bf16.mxu0 %vm1293_vm2, %v1759_v60 }
 0x217   : > { %v1580_v4 = vadd.f32 %v3451_v17, %v4088_v63  ;;  %v1571_v5 = vpop.f32.mrb[71].mxu1  ;;  %3517 = vmatmul.mubr.msk.bf16.gmra.mrb[64].mxu0 %vm1293_vm2, %v1760_v59  ;;  %v1717_v7 = vmax.f32 %v1577_v1, 0.0 }
 0x218   : > { %v1572_v6 = vadd.f32 %v4088_v63, %v1571_v5  ;;  %v1715_v9 = vmax.f32 %v1569_v3, 0.0 }
 0x219   : > { %v1718_v8 = vmax.f32 %v1580_v4, 0.0 }
 0x21a   : > { %v1716_v10 = vmax.f32 %v1572_v6, 0.0 }
 0x21b   : > { %v1762_v13 = vpack.c.bf16 %v1718_v8, %v1717_v7 }
 0x21c   : > { %v1761_v11 = vpack.c.bf16 %v1716_v10, %v1715_v9  ;;  %v3454_v61 = vpop.f32.mrb[72].mxu1 }
 0x21d   : > { %v1593_v55 = vadd.f32 %v3454_v61, %v4088_v63  ;;  %v1584_v33 = vpop.f32.mrb[73].mxu1 }
 0x21e   : > { %v1585_v39 = vadd.f32 %v4088_v63, %v1584_v33  ;;  %v3455_v19 = vpop.f32.mrb[74].mxu1  ;;  %3520 = vmatprep.mubr.msk.bf16.mxu0 %vm1293_vm2, %v1761_v11 }
 0x21f   : > { %v1596_v12 = vadd.f32 %v3455_v19, %v4088_v63  ;;  %v1587_v62 = vpop.f32.mrb[75].mxu1  ;;  %3521 = vmatmul.mubr.msk.bf16.gmra.mrb[68].mxu0 %vm1293_vm2, %v1762_v13  ;;  %v1721_v15 = vmax.f32 %v1593_v55, 0.0 }
 0x220   : > { %v1588_v14 = vadd.f32 %v4088_v63, %v1587_v62  ;;  %v1719_v16 = vmax.f32 %v1585_v39, 0.0 }
 0x221   : > { %v1722_v56 = vmax.f32 %v1596_v12, 0.0 }
 0x222   : > { %v1720_v18 = vmax.f32 %v1588_v14, 0.0 }
 0x223   : > { %v1764_v20 = vpack.c.bf16 %v1722_v56, %v1721_v15 }
 0x224   : > { %v1763_v21 = vpack.c.bf16 %v1720_v18, %v1719_v16  ;;  %v3458_v22 = vpop.f32.mrb[76].mxu1 }
 0x225   : > { %v1609_v23 = vadd.f32 %v3458_v22, %v4088_v63  ;;  %v1600_v24 = vpop.f32.mrb[77].mxu1 }
 0x226   : > { %v1601_v25 = vadd.f32 %v4088_v63, %v1600_v24  ;;  %v3459_v26 = vpop.f32.mrb[78].mxu1  ;;  %3524 = vmatprep.mubr.msk.bf16.mxu0 %vm1293_vm2, %v1763_v21 }
 0x227   : > { %v1612_v27 = vadd.f32 %v3459_v26, %v4088_v63  ;;  %v1603_v28 = vpop.f32.mrb[79].mxu1  ;;  %3525 = vmatmul.mubr.msk.bf16.gmra.mrb[72].mxu0 %vm1293_vm2, %v1764_v20  ;;  %v1725_v30 = vmax.f32 %v1609_v23, 0.0 }
 0x228   : > { %v1604_v29 = vadd.f32 %v4088_v63, %v1603_v28  ;;  %v1723_v32 = vmax.f32 %v1601_v25, 0.0 }
 0x229   : > { %v1726_v31 = vmax.f32 %v1612_v27, 0.0 }
 0x22a   : > { %v1724_v34 = vmax.f32 %v1604_v29, 0.0  ;;  %v2266_v29 = vpop.permute.xlu0 %2265 }
 0x22b   : > { %v1766_v35 = vpack.c.bf16 %v1726_v31, %v1725_v30 }
 0x22c   : > { %v1765_v36 = vpack.c.bf16 %v1724_v34, %v1723_v32  ;;  %v3462_v37 = vpop.f32.mrb[80].mxu1 }
 0x22d   : > { %v1625_v38 = vadd.f32 %v3462_v37, %v4088_v63  ;;  %v1616_v40 = vpop.f32.mrb[81].mxu1 }
 0x22e   : > { %v1617_v41 = vadd.f32 %v4088_v63, %v1616_v40  ;;  %v3463_v42 = vpop.f32.mrb[82].mxu1  ;;  %3528 = vmatprep.mubr.msk.bf16.mxu0 %vm1293_vm2, %v1765_v36  ;;  %v2271_v30 = vpop.permute.xlu0 %2270 }
 0x22f   : > { %v1628_v43 = vadd.f32 %v3463_v42, %v4088_v63  ;;  %v1619_v44 = vpop.f32.mrb[83].mxu1  ;;  %3529 = vmatmul.mubr.msk.bf16.gmra.mrb[76].mxu0 %vm1293_vm2, %v1766_v35  ;;  %v1729_v46 = vmax.f32 %v1625_v38, 0.0  ;;  %v2276_v35 = vpop.permute.xlu1 %2275 }
 0x230   : > { %v1620_v45 = vadd.f32 %v4088_v63, %v1619_v44  ;;  %v1727_v48 = vmax.f32 %v1617_v41, 0.0 }
 0x231   : > { %v1730_v47 = vmax.f32 %v1628_v43, 0.0 }
 0x232   : > { %v1728_v49 = vmax.f32 %v1620_v45, 0.0  ;;  %v2286_v31 = vpop.permute.xlu0 %2285 }
 0x233   : > { %v1768_v50 = vpack.c.bf16 %v1730_v47, %v1729_v46 }
 0x234   : > { %v1767_v51 = vpack.c.bf16 %v1728_v49, %v1727_v48  ;;  %v3466_v52 = vpop.f32.mrb[84].mxu1 }
 0x235   : > { %v1641_v53 = vadd.f32 %v3466_v52, %v4088_v63  ;;  %v1632_v54 = vpop.f32.mrb[85].mxu1 }
 0x236   : > { %v1633_v57 = vadd.f32 %v4088_v63, %v1632_v54  ;;  %v3467_v58 = vpop.f32.mrb[86].mxu1  ;;  %3532 = vmatprep.mubr.msk.bf16.mxu0 %vm1293_vm2, %v1767_v51  ;;  %v2296_v32 = vpop.permute.xlu0 %2295 }
 0x237   : > { %v1644_v59 = vadd.f32 %v3467_v58, %v4088_v63  ;;  %v1635_v60 = vpop.f32.mrb[87].mxu1  ;;  %3533 = vmatmul.mubr.msk.bf16.gmra.mrb[80].mxu0 %vm1293_vm2, %v1768_v50  ;;  %v1733_v1 = vmax.f32 %v1641_v53, 0.0 }
 0x238   : > { %v1636_v0 = vadd.f32 %v4088_v63, %v1635_v60  ;;  %v1731_v3 = vmax.f32 %v1633_v57, 0.0 }
 0x239   : > { %v1734_v2 = vmax.f32 %v1644_v59, 0.0  ;;  %v4227_v59 = vld [vmem:[%s4444_s7] ss:$0 sm:$0xff] }
 0x23a   : > { %v1732_v17 = vmax.f32 %v1636_v0, 0.0  ;;  %v4186_v34 = vpop.permute.xlu0 %2305 }
 0x23b   : > { %v1770_v4 = vpack.c.bf16 %v1734_v2, %v1733_v1 }
 0x23c   : > { %v1769_v5 = vpack.c.bf16 %v1732_v17, %v1731_v3  ;;  %v3470_v6 = vpop.f32.mrb[88].mxu1 }
 0x23d   : > { %v1657_v7 = vadd.f32 %v3470_v6, %v4088_v63  ;;  %v1648_v8 = vpop.f32.mrb[89].mxu1 }
 0x23e   : > { %v1649_v9 = vadd.f32 %v4088_v63, %v1648_v8  ;;  %v3471_v10 = vpop.f32.mrb[90].mxu1  ;;  %3536 = vmatprep.mubr.msk.bf16.mxu0 %vm1293_vm2, %v1769_v5  ;;  %v4188_v36 = vpop.permute.xlu0 %2315 }
 0x23f   : > { %v1660_v13 = vadd.f32 %v3471_v10, %v4088_v63  ;;  %v1651_v11 = vpop.f32.mrb[91].mxu1  ;;  %3537 = vmatmul.mubr.msk.bf16.gmra.mrb[84].mxu0 %vm1293_vm2, %v1770_v4  ;;  %v1737_v55 = vmax.f32 %v1657_v7, 0.0 }
 0x240   : > { %v1652_v61 = vadd.f32 %v4088_v63, %v1651_v11  ;;  %v1735_v39 = vmax.f32 %v1649_v9, 0.0 }
 0x241   : > { %v1738_v33 = vmax.f32 %v1660_v13, 0.0 }
 0x242   : > { %v1736_v19 = vmax.f32 %v1652_v61, 0.0  ;;  %v4190_v37 = vpop.permute.xlu0 %2325 }
 0x243   : > { %v1772_v12 = vpack.c.bf16 %v1738_v33, %v1737_v55 }
 0x244   : > { %v1771_v62 = vpack.c.bf16 %v1736_v19, %v1735_v39  ;;  %v3474_v14 = vpop.f32.mrb[92].mxu1 }
 0x245   : > { %v1673_v15 = vadd.f32 %v3474_v14, %v4088_v63  ;;  %v1664_v56 = vpop.f32.mrb[93].mxu1 }
 0x246   : > { %v1665_v16 = vadd.f32 %v4088_v63, %v1664_v56  ;;  %v3475_v18 = vpop.f32.mrb[94].mxu1  ;;  %3540 = vmatprep.mubr.msk.bf16.mxu0 %vm1293_vm2, %v1771_v62  ;;  %v4192_v40 = vpop.permute.xlu0 %2335 }
 0x247   : > { %v1676_v20 = vadd.f32 %v3475_v18, %v4088_v63  ;;  %v1667_v21 = vpop.f32.mrb[95].mxu1  ;;  %3541 = vmatmul.mubr.msk.bf16.gmra.mrb[88].mxu0 %vm1293_vm2, %v1772_v12  ;;  %v1741_v23 = vmax.f32 %v1673_v15, 0.0 }
 0x248   : > { %v1668_v22 = vadd.f32 %v4088_v63, %v1667_v21  ;;  %v1739_v25 = vmax.f32 %v1665_v16, 0.0  ;;  %v2281_v63 = vpop.permute.xlu1 %2280 }
 0x249   : > { %v1742_v24 = vmax.f32 %v1676_v20, 0.0 }
 0x24a   : > { %v1740_v26 = vmax.f32 %v1668_v22, 0.0  ;;  %v4194_v42 = vpop.permute.xlu0 %2345 }
 0x24b   : > { %v1774_v27 = vpack.c.bf16 %v1742_v24, %v1741_v23 }
 0x24c   : > { %v1773_v28 = vpack.c.bf16 %v1740_v26, %v1739_v25  ;;  %v2291_v38 = vpop.permute.xlu1 %2290 }
 0x24e   : > { %3544 = vmatprep.mubr.msk.bf16.mxu0 %vm1293_vm2, %v1773_v28  ;;  %v4198_v44 = vpop.permute.xlu0 %2355 }
 0x24f   : > { %3545 = vmatmul.mubr.msk.bf16.gmra.mrb[92].mxu0 %vm1293_vm2, %v1774_v27 }
 0x250   : > { %v2301_v41 = vpop.permute.xlu1 %2300 }
 0x252   : > { %v4202_v46 = vpop.permute.xlu0 %2365 }
 0x254   : > { %v4196_v43 = vpop.permute.xlu1 %2310 }
 0x256   : > { %v4206_v48 = vpop.permute.xlu0 %2375 }
 0x258   : > { %v4200_v45 = vpop.permute.xlu1 %2320 }
 0x25a   : > { %v4210_v50 = vpop.permute.xlu0 %2385 }
 0x25c   : > { %v4204_v47 = vpop.permute.xlu1 %2330 }
 0x25e   : > { %v4214_v52 = vpop.permute.xlu0 %2395 }
 0x260   : > { %v4208_v49 = vpop.permute.xlu1 %2340 }
 0x262   : > { %v4218_v54 = vpop.permute.xlu0 %2405 }
 0x264   : > { %v4212_v51 = vpop.permute.xlu1 %2350 }
 0x266   : > { %v4222_v58 = vpop.permute.xlu0 %2415 }
 0x268   : > { %v4216_v53 = vpop.permute.xlu1 %2360 }
 0x26a   : > { %v4232_v17 = vpop.permute.xlu0 %2425 }
 0x26c   : > { %v4220_v57 = vpop.permute.xlu1 %2370 }
 0x26e   : > { %v4239_v55 = vpop.permute.xlu0 %2435 }
 0x270   : > { %v4229_v1 = vpop.permute.xlu1 %2380 }
 0x272   : > { %v4247_v24 = vpop.permute.xlu0 %2445 }
 0x274   : > { %v4237_v10 = vpop.permute.xlu1 %2390 }
 0x278   : > { %v4244_v20 = vpop.permute.xlu1 %2400 }
 0x2aa   : > { %v3486_v60 = vpop.f32.mrb[32].mxu0 }
 0x2ab   : > { %v1944_v0 = vpop.f32.mrb[33].mxu0  ;;  %v1953_v5 = vadd.f32 %v3486_v60, %v4227_v59  ;;  %v4250_v60 = vpop.permute.xlu1 %2410 }
 0x2ac   : > { %v1945_v2 = vadd.f32 %v4227_v59, %v1944_v0  ;;  %v3487_v3 = vpop.f32.mrb[34].mxu0 }
 0x2ad   : > { %v1947_v4 = vpop.f32.mrb[35].mxu0  ;;  %v1956_v8 = vadd.f32 %v3487_v3, %v4227_v59  ;;  %v2585_v13 = vadd.f32 %v2276_v35, %v1953_v5 }
 0x2ae   : > { %v1948_v6 = vadd.f32 %v4227_v59, %v1947_v4  ;;  %v2583_v7 = vadd.f32 %v2266_v29, %v1945_v2 }
 0x2af   : > { %v2586_v39 = vadd.f32 %v2281_v63, %v1956_v8 }
 0x2b0   : > { %v2584_v9 = vadd.f32 %v2271_v30, %v1948_v6 }
 0x2b2   : > { %v2647_v11 = vmax.f32 %v2583_v7, %v2584_v9  ;;  %v3490_v61 = vpop.f32.mrb[36].mxu0 }
 0x2b3   : > { %v1960_v33 = vpop.f32.mrb[37].mxu0  ;;  %v1969_v15 = vadd.f32 %v3490_v61, %v4227_v59 }
 0x2b4   : > { %v2648_v19 = vmax.f32 %v2647_v11, %v2585_v13  ;;  %v1961_v12 = vadd.f32 %v4227_v59, %v1960_v33  ;;  %v3491_v62 = vpop.f32.mrb[38].mxu0  ;;  %v4260_v13 = vpop.permute.xlu1 %2420 }
 0x2b5   : > { %v1963_v14 = vpop.f32.mrb[39].mxu0  ;;  %v1972_v22 = vadd.f32 %v3491_v62, %v4227_v59  ;;  %v2589_v25 = vadd.f32 %v2296_v32, %v1969_v15 }
 0x2b6   : > { %v2587_v56 = vadd.f32 %v2286_v31, %v1961_v12  ;;  %v2649_v16 = vmax.f32 %v2648_v19, %v2586_v39  ;;  %v1964_v18 = vadd.f32 %v4227_v59, %v1963_v14 }
 0x2b7   : > { %v2590_v29 = vadd.f32 %v2301_v41, %v1972_v22 }
 0x2b8   : > { %v2650_v21 = vmax.f32 %v2649_v16, %v2587_v56  ;;  %v2588_v23 = vadd.f32 %v2291_v38, %v1964_v18  ;;  %v4254_v38 = vpop.permute.xlu0 %2455  ;;  %v4271_v18 = vpop.permute.xlu1 %2430 }
 0x2ba   : > { %v2651_v26 = vmax.f32 %v2650_v21, %v2588_v23  ;;  %v3494_v27 = vpop.f32.mrb[40].mxu0 }
 0x2bb   : > { %v1976_v28 = vpop.f32.mrb[41].mxu0  ;;  %v1985_v2 = vadd.f32 %v3494_v27, %v4227_v59 }
 0x2bc   : > { %v2652_v30 = vmax.f32 %v2651_v26, %v2589_v25  ;;  %v1977_v35 = vadd.f32 %v4227_v59, %v1976_v28  ;;  %v3495_v31 = vpop.f32.mrb[42].mxu0  ;;  %v4264_v19 = vpop.permute.xlu0 %2470 }
 0x2bd   : > { %v1979_v63 = vpop.f32.mrb[43].mxu0  ;;  %v1988_v4 = vadd.f32 %v3495_v31, %v4227_v59  ;;  %v2593_v6 = vadd.f32 %v4188_v36, %v1985_v2 }
 0x2be   : > { %v2653_v0 = vmax.f32 %v2652_v30, %v2590_v29  ;;  %v1980_v3 = vadd.f32 %v4227_v59, %v1979_v63  ;;  %v2591_v32 = vadd.f32 %v4186_v34, %v1977_v35 }
 0x2bf   : > { %v2594_v11 = vadd.f32 %v4200_v45, %v1988_v4 }
 0x2c0   : > { %v2592_v41 = vadd.f32 %v4196_v43, %v1980_v3  ;;  %v2654_v5 = vrot.slane %v2653_v0, 4  ;;  %v4274_v25 = vpop.permute.xlu0 %2510 }
 0x2c2   : > { %v2660_v7 = vmax.f32 %v2591_v32, %v2592_v41  ;;  %v3498_v8 = vpop.f32.mrb[44].mxu0  ;;  %v2655_v34 = vmax.f32 %v2653_v0, %v2654_v5  ;;  %v4280_v0 = vpop.permute.xlu1 %2440 }
 0x2c3   : > { %v1992_v9 = vpop.f32.mrb[45].mxu0  ;;  %v2001_v43 = vadd.f32 %v3498_v8, %v4227_v59 }
 0x2c4   : > { %v2661_v61 = vmax.f32 %v2660_v7, %v2593_v6  ;;  %v1993_v33 = vadd.f32 %v4227_v59, %v1992_v9  ;;  %v3499_v39 = vpop.f32.mrb[46].mxu0  ;;  %v2656_v16 = vrot.slane %v2655_v34, 2  ;;  %v4285_v32 = vpop.permute.xlu0 %2545 }
 0x2c5   : > { %v1995_v12 = vpop.f32.mrb[47].mxu0  ;;  %v2004_v56 = vadd.f32 %v3499_v39, %v4227_v59  ;;  %v2597_v21 = vadd.f32 %v4192_v40, %v2001_v43 }
 0x2c6   : > { %v2595_v62 = vadd.f32 %v4190_v37, %v1993_v33  ;;  %v2662_v36 = vmax.f32 %v2661_v61, %v2594_v11  ;;  %v1996_v14 = vadd.f32 %v4227_v59, %v1995_v12  ;;  %v2657_v30 = vmax.f32 %v2655_v34, %v2656_v16  ;;  %v4291_v12 = vpop.permute.xlu1 %2450 }
 0x2c7   : > { %v2598_v37 = vadd.f32 %v4208_v49, %v2004_v56 }
 0x2c8   : > { %v2663_v15 = vmax.f32 %v2662_v36, %v2595_v62  ;;  %v2596_v45 = vadd.f32 %v4204_v47, %v1996_v14  ;;  %v2658_v4 = vrot.slane %v2657_v30, 1  ;;  %v4295_v14 = vpop.permute.xlu0 %2515 }
 0x2ca   : > { %v2664_v22 = vmax.f32 %v2663_v15, %v2596_v45  ;;  %v3502_v23 = vpop.f32.mrb[48].mxu0  ;;  %v2659_v39 = vmax.f32 %v2657_v30, %v2658_v4 }
 0x2cb   : > { %v2008_v26 = vpop.f32.mrb[49].mxu0  ;;  %v2017_v47 = vadd.f32 %v3502_v23, %v4227_v59 }
 0x2cc   : > { %v2665_v27 = vmax.f32 %v2664_v22, %v2597_v21  ;;  %v2009_v28 = vadd.f32 %v4227_v59, %v2008_v26  ;;  %v3503_v29 = vpop.f32.mrb[50].mxu0  ;;  %v3066_v16 = vpack.c.bf16 %v2659_v39, %v2659_v39 }
 0x2cd   : > { %v2011_v35 = vpop.f32.mrb[51].mxu0  ;;  %v2020_v3 = vadd.f32 %v3503_v29, %v4227_v59  ;;  %v2601_v5 = vadd.f32 %v4198_v44, %v2017_v47 }
 0x2ce   : > { %v2666_v31 = vmax.f32 %v2665_v27, %v2598_v37  ;;  %v2012_v63 = vadd.f32 %v4227_v59, %v2011_v35  ;;  %v2599_v2 = vadd.f32 %v4194_v42, %v2009_v28  ;;  %v4300_v27 = vpop.permute.xlu1 %2465  ;;  %v2783_v47 = vunpack.c.l.b16 %v3066_v16 }
 0x2cf   : > { %v2602_v11 = vadd.f32 %v4216_v53, %v2020_v3 }
 0x2d0   : > { %v2667_v40 = vrot.slane %v2666_v31, 4  ;;  %v2600_v49 = vadd.f32 %v4212_v51, %v2012_v63 }
 0x2d2   : > { %v2668_v41 = vmax.f32 %v2666_v31, %v2667_v40  ;;  %v2673_v6 = vmax.f32 %v2599_v2, %v2600_v49  ;;  %v3506_v7 = vpop.f32.mrb[52].mxu0  ;;  %v4304_v31 = vpop.permute.xlu0 %2555 }
 0x2d3   : > { %v2024_v8 = vpop.f32.mrb[53].mxu0  ;;  %v2033_v34 = vadd.f32 %v3506_v7, %v4227_v59 }
 0x2d4   : > { %v2669_v9 = vrot.slane %v2668_v41, 2  ;;  %v2674_v61 = vmax.f32 %v2673_v6, %v2601_v5  ;;  %v2025_v33 = vadd.f32 %v4227_v59, %v2024_v8  ;;  %v3507_v42 = vpop.f32.mrb[54].mxu0  ;;  %v4311_v5 = vpop.permute.xlu1 %2505 }
 0x2d5   : > { %v2027_v51 = vpop.f32.mrb[55].mxu0  ;;  %v2036_v56 = vadd.f32 %v3507_v42, %v4227_v59  ;;  %v2605_v22 = vadd.f32 %v4206_v48, %v2033_v34 }
 0x2d6   : > { %v2670_v43 = vmax.f32 %v2668_v41, %v2669_v9  ;;  %v2603_v62 = vadd.f32 %v4202_v46, %v2025_v33  ;;  %v2675_v44 = vmax.f32 %v2674_v61, %v2602_v11  ;;  %v2028_v36 = vadd.f32 %v4227_v59, %v2027_v51  ;;  %v4314_v11 = vpop.permute.xlu0 %2485 }
 0x2d7   : > { %v2606_v28 = vadd.f32 %v4229_v1, %v2036_v56 }
 0x2d8   : > { %v2671_v15 = vrot.slane %v2670_v43, 1  ;;  %v2676_v53 = vmax.f32 %v2675_v44, %v2603_v62  ;;  %v2604_v45 = vadd.f32 %v4220_v57, %v2028_v36  ;;  %v4321_v36 = vpop.permute.xlu1 %2475 }
 0x2da   : > { %v2672_v21 = vmax.f32 %v2670_v43, %v2671_v15  ;;  %v2677_v23 = vmax.f32 %v2676_v53, %v2604_v45  ;;  %v3510_v26 = vpop.f32.mrb[56].mxu0  ;;  %v4325_v45 = vpop.permute.xlu0 %2525 }
 0x2db   : > { %v2040_v37 = vpop.f32.mrb[57].mxu0  ;;  %v2049_v48 = vadd.f32 %v3510_v26, %v4227_v59 }
 0x2dc   : > { %v3067_v46 = vpack.c.bf16 %v2672_v21, %v2672_v21  ;;  %v2678_v29 = vmax.f32 %v2677_v23, %v2605_v22  ;;  %v2041_v30 = vadd.f32 %v4227_v59, %v2040_v37  ;;  %v3511_v35 = vpop.f32.mrb[58].mxu0 }
 0x2dd   : > { %v2043_v57 = vpop.f32.mrb[59].mxu0  ;;  %v2052_v3 = vadd.f32 %v3511_v35, %v4227_v59  ;;  %v2609_v7 = vadd.f32 %v4214_v52, %v2049_v48  ;;  %v4330_v35 = vpop.permute.xlu1 %2550 }
 0x2de   : > { %v2784_v63 = vunpack.c.l.b16 %v3067_v46  ;;  %v2679_v40 = vmax.f32 %v2678_v29, %v2606_v28  ;;  %v2044_v2 = vadd.f32 %v4227_v59, %v2043_v57  ;;  %v2607_v1 = vadd.f32 %v4210_v50, %v2041_v30 }
 0x2df   : > { %v2610_v42 = vadd.f32 %v4244_v20, %v2052_v3 }
 0x2e0   : > { %v2680_v49 = vrot.slane %v2679_v40, 4  ;;  %v2608_v4 = vadd.f32 %v4237_v10, %v2044_v2  ;;  %v2792_v41 = vsel %vm2791_vm3, %v2784_v63, %v2783_v47  ;;  %v4334_v63 = vpop.permute.xlu0 %2565 }
 0x2e2   : > { %v2681_v6 = vmax.f32 %v2679_v40, %v2680_v49  ;;  %v2686_v8 = vmax.f32 %v2607_v1, %v2608_v4  ;;  %v3514_v9 = vpop.f32.mrb[60].mxu0 }
 0x2e3   : > { %v2056_v61 = vpop.f32.mrb[61].mxu0  ;;  %v2065_v10 = vadd.f32 %v3514_v9, %v4227_v59 }
 0x2e4   : > { %v2682_v33 = vrot.slane %v2681_v6, 2  ;;  %v2687_v39 = vmax.f32 %v2686_v8, %v2609_v7  ;;  %v2057_v34 = vadd.f32 %v4227_v59, %v2056_v61  ;;  %v3515_v50 = vpop.f32.mrb[62].mxu0  ;;  %v2481_v8 = vpop.permute.xlu1 %2480 }
 0x2e5   : > { %v2059_v51 = vpop.f32.mrb[63].mxu0  ;;  %v2068_v56 = vadd.f32 %v3515_v50, %v4227_v59  ;;  %v2613_v21 = vadd.f32 %v4222_v58, %v2065_v10 }
 0x2e6   : > { %v2683_v43 = vmax.f32 %v2681_v6, %v2682_v33  ;;  %v2611_v62 = vadd.f32 %v4218_v54, %v2057_v34  ;;  %v2688_v44 = vmax.f32 %v2687_v39, %v2610_v42  ;;  %v2060_v52 = vadd.f32 %v4227_v59, %v2059_v51  ;;  %v2496_v34 = vpop.permute.xlu0 %2495 }
 0x2e7   : > { %v2614_v37 = vadd.f32 %v4260_v13, %v2068_v56 }
 0x2e8   : > { %v2684_v15 = vrot.slane %v2683_v43, 1  ;;  %v2689_v53 = vmax.f32 %v2688_v44, %v2611_v62  ;;  %v2612_v20 = vadd.f32 %v4250_v60, %v2060_v52  ;;  %v4347_v44 = vpop.permute.xlu1 %2520 }
 0x2ea   : > { %v2685_v16 = vmax.f32 %v2683_v43, %v2684_v15  ;;  %v2690_v22 = vmax.f32 %v2689_v53, %v2612_v20  ;;  %v3518_v23 = vpop.f32.mrb[64].mxu0  ;;  %v2461_v20 = vpop.permute.xlu0 %2460 }
 0x2eb   : > { %v2072_v26 = vpop.f32.mrb[65].mxu0  ;;  %v2081_v57 = vadd.f32 %v3518_v23, %v4227_v59 }
 0x2ec   : > { %v3068_v54 = vpack.c.bf16 %v2685_v16, %v2685_v16  ;;  %v2691_v46 = vmax.f32 %v2690_v22, %v2613_v21  ;;  %v2073_v28 = vadd.f32 %v4227_v59, %v2072_v26  ;;  %v3519_v29 = vpop.f32.mrb[66].mxu0 }
 0x2ed   : > { %v2075_v30 = vpop.f32.mrb[67].mxu0  ;;  %v2084_v40 = vadd.f32 %v3519_v29, %v4227_v59  ;;  %v2617_v1 = vadd.f32 %v4239_v55, %v2081_v57  ;;  %v4356_v57 = vpop.permute.xlu1 %2560 }
 0x2ee   : > { %v2785_v60 = vunpack.c.l.b16 %v3068_v54  ;;  %v2692_v47 = vmax.f32 %v2691_v46, %v2614_v37  ;;  %v2076_v58 = vadd.f32 %v4227_v59, %v2075_v30  ;;  %v2615_v13 = vadd.f32 %v4232_v17, %v2073_v28 }
 0x2ef   : > { %v2618_v61 = vadd.f32 %v4280_v0, %v2084_v40 }
 0x2f0   : > { %v2693_v48 = vrot.slane %v2692_v47, 4  ;;  %v2616_v2 = vadd.f32 %v4271_v18, %v2076_v58  ;;  %v2794_v3 = vsel %vm2793_vm4, %v2785_v60, %v2792_v41 }
 0x2f2   : > { %v2694_v49 = vmax.f32 %v2692_v47, %v2693_v48  ;;  %v2699_v4 = vmax.f32 %v2615_v13, %v2616_v2  ;;  %v3522_v6 = vpop.f32.mrb[68].mxu0 }
 0x2f3   : > { %v2088_v7 = vpop.f32.mrb[69].mxu0  ;;  %v2097_v17 = vadd.f32 %v3522_v6, %v4227_v59 }
 0x2f4   : > { %v2695_v9 = vrot.slane %v2694_v49, 2  ;;  %v2700_v33 = vmax.f32 %v2699_v4, %v2617_v1  ;;  %v2089_v42 = vadd.f32 %v4227_v59, %v2088_v7  ;;  %v3523_v39 = vpop.f32.mrb[70].mxu0 }
 0x2f5   : > { %v2091_v50 = vpop.f32.mrb[71].mxu0  ;;  %v2100_v62 = vadd.f32 %v3523_v39, %v4227_v59  ;;  %v2621_v15 = vadd.f32 %v4254_v38, %v2097_v17 }
 0x2f6   : > { %v2696_v18 = vmax.f32 %v2694_v49, %v2695_v9  ;;  %v2619_v41 = vadd.f32 %v4247_v24, %v2089_v42  ;;  %v2701_v10 = vmax.f32 %v2700_v33, %v2618_v61  ;;  %v2092_v55 = vadd.f32 %v4227_v59, %v2091_v50  ;;  %v2491_v42 = vpop.permute.xlu1 %2490 }
 0x2f7   : > { %v2622_v24 = vadd.f32 %v2461_v20, %v2100_v62 }
 0x2f8   : > { %v2697_v51 = vrot.slane %v2696_v18, 1  ;;  %v2702_v43 = vmax.f32 %v2701_v10, %v2619_v41  ;;  %v2620_v0 = vadd.f32 %v4291_v12, %v2092_v55  ;;  %v2501_v55 = vpop.permute.xlu0 %2500 }
 0x2fa   : > { %v2698_v52 = vmax.f32 %v2696_v18, %v2697_v51  ;;  %v2703_v53 = vmax.f32 %v2702_v43, %v2620_v0  ;;  %v3526_v56 = vpop.f32.mrb[72].mxu0 }
 0x2fb   : > { %v2104_v16 = vpop.f32.mrb[73].mxu0  ;;  %v2113_v12 = vadd.f32 %v3526_v56, %v4227_v59 }
 0x2fc   : > { %v3069_v21 = vpack.c.bf16 %v2698_v52, %v2698_v52  ;;  %v2704_v22 = vmax.f32 %v2703_v53, %v2621_v15  ;;  %v2105_v23 = vadd.f32 %v4227_v59, %v2104_v16  ;;  %v3527_v26 = vpop.f32.mrb[74].mxu0  ;;  %v2531_v15 = vpop.permute.xlu1 %2530 }
 0x2fd   : > { %v2107_v54 = vpop.f32.mrb[75].mxu0  ;;  %v2116_v38 = vadd.f32 %v3527_v26, %v4227_v59  ;;  %v2625_v40 = vadd.f32 %v4321_v36, %v2113_v12 }
 0x2fe   : > { %v2786_v37 = vunpack.c.l.b16 %v3069_v21  ;;  %v2705_v46 = vmax.f32 %v2704_v22, %v2622_v24  ;;  %v2108_v28 = vadd.f32 %v4227_v59, %v2107_v54  ;;  %v2623_v30 = vadd.f32 %v4300_v27, %v2105_v23 }
 0x2ff   : > { %v2626_v1 = vadd.f32 %v2481_v8, %v2116_v38 }
 0x300   : > { %v2706_v29 = vrot.slane %v2705_v46, 4  ;;  %v2624_v60 = vadd.f32 %v4264_v19, %v2108_v28  ;;  %v2796_v47 = vsel %vm2795_vm5, %v2786_v37, %v2794_v3  ;;  %v2571_v28 = vpop.permute.xlu1 %2570 }
 0x302   : > { %v2707_v58 = vmax.f32 %v2705_v46, %v2706_v29  ;;  %v2712_v48 = vmax.f32 %v2623_v30, %v2624_v60  ;;  %v3530_v13 = vpop.f32.mrb[76].mxu0 }
 0x303   : > { %v2120_v2 = vpop.f32.mrb[77].mxu0  ;;  %v2129_v9 = vadd.f32 %v3530_v13, %v4227_v59 }
 0x304   : > { %v2708_v49 = vrot.slane %v2707_v58, 2  ;;  %v2713_v4 = vmax.f32 %v2712_v48, %v2625_v40  ;;  %v2121_v6 = vadd.f32 %v4227_v59, %v2120_v2  ;;  %v3531_v7 = vpop.f32.mrb[78].mxu0 }
 0x305   : > { %v2123_v27 = vpop.f32.mrb[79].mxu0  ;;  %v2132_v17 = vadd.f32 %v3531_v7, %v4227_v59  ;;  %v2629_v18 = vadd.f32 %v2496_v34, %v2129_v9 }
 0x306   : > { %v2709_v61 = vmax.f32 %v2707_v58, %v2708_v49  ;;  %v2627_v19 = vadd.f32 %v4314_v11, %v2121_v6  ;;  %v2714_v3 = vmax.f32 %v2713_v4, %v2626_v1  ;;  %v2124_v33 = vadd.f32 %v4227_v59, %v2123_v27  ;;  %v2536_v6 = vpop.permute.xlu1 %2535 }
 0x307   : > { %v2630_v62 = vadd.f32 %v2501_v55, %v2132_v17 }
 0x308   : > { %v2710_v36 = vrot.slane %v2709_v61, 1  ;;  %v2715_v39 = vmax.f32 %v2714_v3, %v2627_v19  ;;  %v2628_v50 = vadd.f32 %v2491_v42, %v2124_v33 }
 0x30a   : > { %v2711_v8 = vmax.f32 %v2709_v61, %v2710_v36  ;;  %v2716_v41 = vmax.f32 %v2715_v39, %v2628_v50  ;;  %v3534_v10 = vpop.f32.mrb[80].mxu0  ;;  %v2541_v61 = vpop.permute.xlu0 %2540 }
 0x30b   : > { %v2136_v51 = vpop.f32.mrb[81].mxu0  ;;  %v2145_v16 = vadd.f32 %v3534_v10, %v4227_v59 }
 0x30c   : > { %v3070_v43 = vpack.c.bf16 %v2711_v8, %v2711_v8  ;;  %v2717_v0 = vmax.f32 %v2716_v41, %v2629_v18  ;;  %v2137_v11 = vadd.f32 %v4227_v59, %v2136_v51  ;;  %v3535_v52 = vpop.f32.mrb[82].mxu0 }
 0x30d   : > { %v2139_v53 = vpop.f32.mrb[83].mxu0  ;;  %v2148_v34 = vadd.f32 %v3535_v52, %v4227_v59  ;;  %v2633_v37 = vadd.f32 %v4295_v14, %v2145_v16 }
 0x30e   : > { %v2787_v56 = vunpack.c.l.b16 %v3070_v43  ;;  %v2718_v20 = vmax.f32 %v2717_v0, %v2630_v62  ;;  %v2140_v21 = vadd.f32 %v4227_v59, %v2139_v53  ;;  %v2631_v22 = vadd.f32 %v4311_v5, %v2137_v11 }
 0x30f   : > { %v2634_v30 = vadd.f32 %v4347_v44, %v2148_v34  ;;  %v2576_v34 = vpop.permute.xlu1 %2575 }
 0x310   : > { %v2719_v24 = vrot.slane %v2718_v20, 4  ;;  %v2632_v23 = vadd.f32 %v4274_v25, %v2140_v21  ;;  %v2798_v26 = vsel %vm2797_vm6, %v2787_v56, %v2796_v47 }
 0x312   : > { %v2720_v54 = vmax.f32 %v2718_v20, %v2719_v24  ;;  %v2725_v46 = vmax.f32 %v2631_v22, %v2632_v23  ;;  %v3538_v12 = vpop.f32.mrb[84].mxu0 }
 0x313   : > { %v2152_v38 = vpop.f32.mrb[85].mxu0  ;;  %v2161_v48 = vadd.f32 %v3538_v12, %v4227_v59 }
 0x314   : > { %v2721_v29 = vrot.slane %v2720_v54, 2  ;;  %v2726_v60 = vmax.f32 %v2725_v46, %v2633_v37  ;;  %v2153_v58 = vadd.f32 %v4227_v59, %v2152_v38  ;;  %v3539_v40 = vpop.f32.mrb[86].mxu0 }
 0x315   : > { %v2155_v5 = vpop.f32.mrb[87].mxu0  ;;  %v2164_v1 = vadd.f32 %v3539_v40, %v4227_v59  ;;  %v2637_v7 = vadd.f32 %v2536_v6, %v2161_v48 }
 0x316   : > { %v2722_v13 = vmax.f32 %v2720_v54, %v2721_v29  ;;  %v2635_v25 = vadd.f32 %v4325_v45, %v2153_v58  ;;  %v2727_v47 = vmax.f32 %v2726_v60, %v2634_v30  ;;  %v2156_v14 = vadd.f32 %v4227_v59, %v2155_v5  ;;  %v2581_v29 = vpop.permute.xlu1 %2580 }
 0x317   : > { %v2638_v33 = vadd.f32 %v2541_v61, %v2164_v1 }
 0x318   : > { %v2723_v2 = vrot.slane %v2722_v13, 1  ;;  %v2728_v49 = vmax.f32 %v2727_v47, %v2635_v25  ;;  %v2636_v4 = vadd.f32 %v2531_v15, %v2156_v14 }
 0x31a   : > { %v2724_v44 = vmax.f32 %v2722_v13, %v2723_v2  ;;  %v2729_v9 = vmax.f32 %v2728_v49, %v2636_v4  ;;  %v3542_v27 = vpop.f32.mrb[88].mxu0 }
 0x31b   : > { %v2168_v19 = vpop.f32.mrb[89].mxu0  ;;  %v2177_v50 = vadd.f32 %v3542_v27, %v4227_v59 }
 0x31c   : > { %v3071_v3 = vpack.c.bf16 %v2724_v44, %v2724_v44  ;;  %v2730_v42 = vmax.f32 %v2729_v9, %v2637_v7  ;;  %v2169_v45 = vadd.f32 %v4227_v59, %v2168_v19  ;;  %v3543_v36 = vpop.f32.mrb[90].mxu0 }
 0x31d   : > { %v2171_v39 = vpop.f32.mrb[91].mxu0  ;;  %v2180_v41 = vadd.f32 %v3543_v36, %v4227_v59  ;;  %v2641_v0 = vadd.f32 %v4304_v31, %v2177_v50 }
 0x31e   : > { %v2731_v17 = vmax.f32 %v2730_v42, %v2638_v33  ;;  %v2172_v8 = vadd.f32 %v4227_v59, %v2171_v39  ;;  %v2788_v18 = vunpack.c.l.b16 %v3071_v3  ;;  %v2639_v55 = vadd.f32 %v4285_v32, %v2169_v45 }
 0x31f   : > { %v2642_v56 = vadd.f32 %v4356_v57, %v2180_v41 }
 0x320   : > { %v2732_v10 = vrot.slane %v2731_v17, 4  ;;  %v2640_v51 = vadd.f32 %v4330_v35, %v2172_v8  ;;  %v2800_v43 = vsel %vm2799_vm7, %v2788_v18, %v2798_v26 }
 0x322   : > { %v2733_v62 = vmax.f32 %v2731_v17, %v2732_v10  ;;  %v2738_v11 = vmax.f32 %v2639_v55, %v2640_v51  ;;  %v3546_v52 = vpop.f32.mrb[92].mxu0 }
 0x323   : > { %v2184_v15 = vpop.f32.mrb[93].mxu0  ;;  %v2193_v24 = vadd.f32 %v3546_v52, %v4227_v59 }
 0x324   : > { %v2734_v53 = vrot.slane %v2733_v62, 2  ;;  %v2739_v20 = vmax.f32 %v2738_v11, %v2641_v0  ;;  %v2185_v16 = vadd.f32 %v4227_v59, %v2184_v15  ;;  %v3547_v21 = vpop.f32.mrb[94].mxu0 }
 0x325   : > { %v2187_v32 = vpop.f32.mrb[95].mxu0  ;;  %v2196_v37 = vadd.f32 %v3547_v21, %v4227_v59  ;;  %v2645_v46 = vadd.f32 %v2576_v34, %v2193_v24 }
 0x326   : > { %v2735_v22 = vmax.f32 %v2733_v62, %v2734_v53  ;;  %v2643_v35 = vadd.f32 %v4334_v63, %v2185_v16  ;;  %v2740_v23 = vmax.f32 %v2739_v20, %v2642_v56  ;;  %v2188_v31 = vadd.f32 %v4227_v59, %v2187_v32 }
 0x327   : > { %v2646_v30 = vadd.f32 %v2581_v29, %v2196_v37 }
 0x328   : > { %v2736_v26 = vrot.slane %v2735_v22, 1  ;;  %v2741_v54 = vmax.f32 %v2740_v23, %v2643_v35  ;;  %v2644_v57 = vadd.f32 %v2571_v28, %v2188_v31 }
 0x32a   : > { %v2742_v12 = vmax.f32 %v2741_v54, %v2644_v57  ;;  %v2737_v38 = vmax.f32 %v2735_v22, %v2736_v26 }
 0x32c   : > { %v2743_v60 = vmax.f32 %v2742_v12, %v2645_v46  ;;  %v3072_v58 = vpack.c.bf16 %v2737_v38, %v2737_v38 }
 0x32e   : > { %v2744_v40 = vmax.f32 %v2743_v60, %v2646_v30  ;;  %v2789_v48 = vunpack.c.l.b16 %v3072_v58 }
 0x330   : > { %v2745_v63 = vrot.slane %v2744_v40, 4  ;;  %v2802_v5 = vsel %vm2801_vm8, %v2789_v48, %v2800_v43 }
 0x332   : > { %v2746_v13 = vmax.f32 %v2744_v40, %v2745_v63 }
 0x334   : > { %v2747_v25 = vrot.slane %v2746_v13, 2 }
 0x336   : > { %v2748_v47 = vmax.f32 %v2746_v13, %v2747_v25 }
 0x338   : > { %v2749_v59 = vrot.slane %v2748_v47, 1 }
 0x33a   : > { %v2750_v28 = vmax.f32 %v2748_v47, %v2749_v59 }
 0x33c   : > { %v3073_v14 = vpack.c.bf16 %v2750_v28, %v2750_v28 }
 0x33e   : > { %v2790_v2 = vunpack.c.l.b16 %v3073_v14 }
 0x340   : > { %v2804_v49 = vsel %vm2803_vm9, %v2790_v2, %v2802_v5 }
 0x341   : > { %v2805_v1 = vpack.c.b16 %v2804_v49, %v2804_v49 }
 0x343   : > { %2807 = vst [vmem:[%s331_s12] sm:$0xf] %v2805_v1 }
 0x344   : > { %3647 = shalt.err (!%p3644_p3)
}
 0x345   : > { %s3648_s19 = scalar_lea.hbm %s4395_s18, 64  ;;  %s3652_s10 = scalar_lea.hbm %s4445_s8, 128 }
 0x346   : > { %p3649_p4 = scmp.ne.s32.totalorder %s4395_s18, %s3648_s19  ;;  %p3653_p9 = scmp.lt.u32.totalorder %s4395_s18, %s4445_s8 }
 0x347   : > { %p3654_p10 = scmp.lt.u32.totalorder %s3652_s10, %s3648_s19  ;;  %p3656_p12 = scmp.lt.u32.totalorder %s3648_s19, %s4395_s18 }
 0x348   : > { %p3650_p7 = pnand %p3649_p4, %p3780_p5 }
 0x349   : > { %p3655_p11 = por %p3654_p10, %p3653_p9 }
 0x34a   : > { %p3651_p8 = pneg %p3650_p7 }
 0x34b   : > { %p3657_p13 = por %p3656_p12, %p3655_p11 }
 0x34d   : > { %p3658_p0 = pnand %p3657_p13, %p3651_p8 }
 0x34f   : > { %3661 = shalt.err (!%p3658_p0)
}
 0x350   : > { %3552 = dma.vmem_to_hbm [thread:$0]  (%p3780_p5), %s4397_s13, 64, %s4395_s18, %s2809_s20  }
 0x351 PF: > { %p3558_p1 = scmp.ge.s32.totalorder %s3696_s30, 2  ;;  %s2834_s22 = sand.u32 1, %s3684_s27  }
 0x352   : > { %s2835_s21 = scalar_lea.sflag [#allocation3], %s2834_s22 }
 0x353   : > { %p3555_p2 = pnand %p3558_p1, %p3784_p6 }
 0x355   : > { %3679 = dma.done.wait (!%p3555_p2), %s2835_s21, 64  }
 0x356   : > { %3681 = vsyncadd (!%p3555_p2), %s2835_s21, 4294967232  ;;  %p18_p3 = scmp.ge.s32.totalorder %s3768_s11, 4   ;;  %s4448_s27 = smov %s3688_s28 }
 0x357   : > { %s4449_s28 = smov %s3692_s29  ;;  %s4450_s29 = smov %s3778_s14 }
 0x358   : > { %s4451_s30 = smov %s3768_s11  ;;  %20 = sbr.rel (!%p18_p3) target bundleno = 3 (0x3), region = 93 }
 0x35f   :  { %2840 = vsyncpa [#allocation3], 1 }
 0x360   :  { %2842 = vsyncpa [#allocation3 + $0x1], 1 }

</bundles_post_ra>
